<compile_context>
chip_gen: v7x
topology: tpu7x:2x2x1
jax: 0.10.0
libtpu: 0.0.40
codegen_flags: <defaults>
</compile_context>

<pallas_src>
import functools

import jax
import jax.numpy as jnp
import numpy as np
from jax.experimental import pallas as pl
from jax.experimental.pallas import tpu as pltpu


def _gelu_tanh(x):
    # tanh-approximate GELU: the transcendental routes to the EUP (its own
    # VLIW slot) instead of lax.erf's long VPU polynomial.  ~1e-3 absolute
    # difference vs torch.nn.GELU()'s exact erf form, inside the bf16 budget.
    c = np.float32(0.7978845608028654)                    # sqrt(2/pi)
    return np.float32(0.5) * x * (
        np.float32(1.0) + jnp.tanh(c * (x + np.float32(0.044715) * x * x * x)))


def _gelu_erf(x):
    # Exact erf GELU (torch.nn.GELU default) -- used only by the reference.
    return 0.5 * x * (1.0 + jax.lax.erf(x * np.float32(1.0 / np.sqrt(2.0))))


def _round_up(n, m):
    return ((n + m - 1) // m) * m


def _cdiv(a, b):
    return -(-a // b)


def _pick_hid_tile(hid, target):
    """Largest multiple of 128 <= target that divides hid (else hid itself)."""
    if hid <= target or hid % 128:
        return hid
    for t in range((target // 128) * 128, 0, -128):
        if hid % t == 0:
            return t
    return hid


def bridge_kernel(x_ref, wc_ref, w1_ref, w2_ref, vecs_ref, b1_ref, out_ref,
                  *, ln_eps, hid_tile, n_hid_chunks):
    x = x_ref[...]                                        # (tm, C) f32

    bn_shift = vecs_ref[0:1, :]
    ln_g     = vecs_ref[1:2, :]
    ln_b     = vecs_ref[2:3, :]
    b2       = vecs_ref[3:4, :]

    # --- 1x1 conv (BatchNorm scale pre-folded into weight) + BN shift + GELU
    y = jnp.dot(x.astype(jnp.bfloat16), wc_ref[...],
                preferred_element_type=jnp.float32)
    y = _gelu_tanh(y + bn_shift)

    # --- skip connection ---
    z = x + y

    # --- LayerNorm over the (unpadded) channel dim ---
    inv_c = np.float32(1.0 / z.shape[-1])
    mean = jnp.sum(z, axis=-1, keepdims=True) * inv_c
    centered = z - mean
    var = jnp.sum(centered * centered, axis=-1, keepdims=True) * inv_c
    ln = centered * jax.lax.rsqrt(var + ln_eps)
    ln = ln * ln_g + ln_b

    # --- FFN: fc1 -> GELU -> fc2 (hidden dim tiled), residual with ln ---
    ln_bf = ln.astype(jnp.bfloat16)
    if n_hid_chunks == 1:
        h = jnp.dot(ln_bf, w1_ref[...], preferred_element_type=jnp.float32)
        h = _gelu_tanh(h + b1_ref[...])
        o = jnp.dot(h.astype(jnp.bfloat16), w2_ref[...],
                    preferred_element_type=jnp.float32)
    else:
        # Keeps the live fc1 intermediate at (tm, hid_tile) f32 instead of
        # (tm, hid); fc2 partial products accumulate in a (tm, C) f32 carry.
        def chunk(j, acc):
            off = pl.multiple_of(j * hid_tile, hid_tile)
            h = jnp.dot(ln_bf, w1_ref[:, pl.ds(off, hid_tile)],
                        preferred_element_type=jnp.float32)
            h = _gelu_tanh(h + b1_ref[:, pl.ds(off, hid_tile)])
            return acc + jnp.dot(h.astype(jnp.bfloat16),
                                 w2_ref[pl.ds(off, hid_tile), :],
                                 preferred_element_type=jnp.float32)
        o = jax.lax.fori_loop(0, n_hid_chunks, chunk,
                              jnp.zeros_like(ln), unroll=True)

    out_ref[...] = o + b2 + ln


def bridge_forward(x, params, H, W, *, tm=1024, hid_chunk=512):
    """x: (B, L, C) float32 with L == H*W. Returns (B, L, C) float32."""
    B, L, C = x.shape
    assert L == H * W, "invalid input size"
    N = B * L
    hid = params["w1"].shape[1]

    # Token tile: multiple of 128 rows, capped so there are >=2 grid steps
    # (lets the "parallel" axis shard across v7x's two TensorCores).
    tm = max(128, min(_round_up(tm, 128), _round_up(N, 128)))
    if N > 128 and _cdiv(N, tm) < 2:
        tm = max(128, _round_up(_cdiv(N, 2), 128))
    N_pad = _round_up(N, tm)

    hid_tile = _pick_hid_tile(hid, hid_chunk)
    n_hid_chunks = hid // hid_tile

    # No channel padding: x/out stay (N, C) in HBM (block last dim == full
    # array dim). Only the token count is row-padded to the tile size.
    xf = x.reshape(N, C)
    if N_pad != N:
        xf = jnp.pad(xf, ((0, N_pad - N), (0, 0)))

    # Fold BatchNorm scale into the 1x1-conv weight (host-side, once); only
    # the shift remains as a bias add inside the kernel.
    wc = (params["wc"] * params["bn_scale"]).astype(jnp.bfloat16)   # (C, C)
    w1 = params["w1"].astype(jnp.bfloat16)                          # (C, hid)
    w2 = params["w2"].astype(jnp.bfloat16)                          # (hid, C)

    # Pack the (1, C) vectors into one operand:
    # row 0: bn_shift, 1: ln_gamma, 2: ln_beta, 3: fc2 bias.
    vecs = jnp.concatenate([params["bn_shift"], params["ln_g"],
                            params["ln_b"], params["b2"]], axis=0)  # (4, C)
    b1 = params["b1"]                                               # (1, hid)

    grid = (N_pad // tm,)
    # Grid-invariant operands: single-buffered (nothing to pipeline).
    const = lambda shape: pl.BlockSpec(shape, lambda i: (0, 0),
                                       pipeline_mode=pl.Buffered(1))

    matmul_flops = 2 * N_pad * (C * C + 2 * C * hid)
    bytes_accessed = (2 * N_pad * C * 4                       # x in + out (f32)
                      + 2 * (C * C + 2 * C * hid)             # bf16 weights
                      + (4 * C + hid) * 4)                    # small vectors
    cost = pl.CostEstimate(flops=matmul_flops,
                           transcendentals=N_pad * (C + hid),
                           bytes_accessed=bytes_accessed)

    out = pl.pallas_call(
        functools.partial(bridge_kernel, ln_eps=np.float32(1e-5),
                          hid_tile=hid_tile, n_hid_chunks=n_hid_chunks),
        out_shape=jax.ShapeDtypeStruct((N_pad, C), jnp.float32),
        grid_spec=pltpu.PrefetchScalarGridSpec(
            num_scalar_prefetch=0,
            grid=grid,
            in_specs=[
                pl.BlockSpec((tm, C), lambda i: (i, 0)),   # token tile (double-buffered)
                const((C, C)),                             # folded conv weight (bf16)
                const((C, hid)),                           # fc1 weight (bf16)
                const((hid, C)),                           # fc2 weight (bf16)
                const((4, C)),                             # packed per-channel vectors
                const((1, hid)),                           # fc1 bias
            ],
            out_specs=pl.BlockSpec((tm, C), lambda i: (i, 0)),
        ),
        compiler_params=pltpu.CompilerParams(
            dimension_semantics=("parallel",),
            vmem_limit_bytes=40 * 1024 * 1024),
        cost_estimate=cost,
    )(xf, wc, w1, w2, vecs, b1)

    if N_pad != N:
        out = out[:N]
    return out.reshape(B, L, C)


def init_params(key, dim, mlp_ratio):
    hid = int(dim * mlp_ratio)
    ks = jax.random.split(key, 10)
    s = np.float32(0.05)
    # Conv2d(dim, dim, 1, bias=False): weight (Cout, Cin, 1, 1) -> store (Cin, Cout)
    conv_w = jax.random.normal(ks[0], (dim, dim, 1, 1), jnp.float32) * s
    wc = jnp.transpose(conv_w[:, :, 0, 0], (1, 0))
    # BatchNorm2d(dim): gamma, beta, running_mean, running_var (eval semantics)
    bn_gamma = 1.0 + 0.1 * jax.random.normal(ks[1], (dim,), jnp.float32)
    bn_beta = 0.1 * jax.random.normal(ks[2], (dim,), jnp.float32)
    bn_mean = 0.1 * jax.random.normal(ks[3], (dim,), jnp.float32)
    bn_var = 1.0 + 0.1 * jax.nn.softplus(jax.random.normal(ks[4], (dim,), jnp.float32))
    bn_scale = bn_gamma * jax.lax.rsqrt(bn_var + 1e-5)
    bn_shift = bn_beta - bn_mean * bn_scale
    # LayerNorm(dim)
    ln_g = 1.0 + 0.1 * jax.random.normal(ks[5], (dim,), jnp.float32)
    ln_b = 0.1 * jax.random.normal(ks[6], (dim,), jnp.float32)
    # FFN linears (stored pre-transposed: (in, out))
    w1 = jax.random.normal(ks[7], (dim, hid), jnp.float32) * s
    b1 = 0.1 * jax.random.normal(ks[8], (hid,), jnp.float32)
    w2 = jax.random.normal(ks[9], (hid, dim), jnp.float32) * s
    b2 = jnp.zeros((dim,), jnp.float32)
    return {
        "wc": wc,
        "bn_scale": bn_scale.reshape(1, dim),
        "bn_shift": bn_shift.reshape(1, dim),
        "ln_g": ln_g.reshape(1, dim),
        "ln_b": ln_b.reshape(1, dim),
        "w1": w1, "b1": b1.reshape(1, hid),
        "w2": w2, "b2": b2.reshape(1, dim),
    }


def ref_forward(x, params, H, W):
    """Pure-JAX f32 reference of the Bridege forward (erf GELU, torch default)."""
    B, L, C = x.shape
    xf = x.reshape(B * L, C)
    y = xf @ params["wc"]
    y = y * params["bn_scale"] + params["bn_shift"]
    y = _gelu_erf(y)
    z = xf + y
    mean = jnp.mean(z, axis=-1, keepdims=True)
    var = jnp.mean(jnp.square(z - mean), axis=-1, keepdims=True)
    ln = (z - mean) * jax.lax.rsqrt(var + np.float32(1e-5))
    ln = ln * params["ln_g"] + params["ln_b"]
    h = _gelu_erf(ln @ params["w1"] + params["b1"])
    o = h @ params["w2"] + params["b2"]
    return (o + ln).reshape(B, L, C)


if __name__ == "__main__":
    key = jax.random.PRNGKey(0)
    k_x, k_p = jax.random.split(key)

    B, H, W, C = 2, 16, 16, 32
    mlp_ratio = 4
    L = H * W

    x = jax.random.normal(k_x, (B, L, C), jnp.float32)
    params = init_params(k_p, C, mlp_ratio)

    out = bridge_forward(x, params, H, W)    # N=512 -> tm=256, 2 grid steps
    out = jax.block_until_ready(out)

    ref = ref_forward(x, params, H, W)
    # bf16 MXU operands (f32 accumulation) + tanh-approx GELU vs erf reference
    # -> compare with a bf16-level tolerance.
    np.testing.assert_allclose(np.asarray(out), np.asarray(ref),
                               rtol=2e-2, atol=2e-2)
    print("KERNEL_OK")
</pallas_src>

<mosaic_0001>
module attributes {stable_mosaic.version = 11 : i64} {
  func.func @bridge_kernel(%arg0: i32, %arg1: memref<256x32xf32, #tpu.memory_space<vmem>>, %arg2: memref<32x32xbf16, #tpu.memory_space<vmem>>, %arg3: memref<32x128xbf16, #tpu.memory_space<vmem>>, %arg4: memref<128x32xbf16, #tpu.memory_space<vmem>>, %arg5: memref<4x32xf32, #tpu.memory_space<vmem>>, %arg6: memref<1x128xf32, #tpu.memory_space<vmem>>, %arg7: memref<256x32xf32, #tpu.memory_space<vmem>>) attributes {dimension_semantics = [#tpu.dimension_semantics<parallel>], iteration_bounds = array<i64: 2>, scalar_prefetch = 0 : i64, scratch_operands = 0 : i64, tpu.core_type = #tpu.core_type<tc>, window_params = [{transform_indices = @transform_0, window_bounds = array<i64: 256, 32>}, {pipeline_mode = #tpu.pipeline_mode<synchronous>, transform_indices = @transform_1, window_bounds = array<i64: 32, 32>}, {pipeline_mode = #tpu.pipeline_mode<synchronous>, transform_indices = @transform_2, window_bounds = array<i64: 32, 128>}, {pipeline_mode = #tpu.pipeline_mode<synchronous>, transform_indices = @transform_3, window_bounds = array<i64: 128, 32>}, {pipeline_mode = #tpu.pipeline_mode<synchronous>, transform_indices = @transform_4, window_bounds = array<i64: 4, 32>}, {pipeline_mode = #tpu.pipeline_mode<synchronous>, transform_indices = @transform_5, window_bounds = array<i64: 1, 128>}, {transform_indices = @transform_6, window_bounds = array<i64: 256, 32>}]} {
    %c0 = arith.constant 0 : index
    %c0_0 = arith.constant 0 : index
    %0 = vector.load %arg1[%c0, %c0_0] : memref<256x32xf32, #tpu.memory_space<vmem>>, vector<256x32xf32>
    %c0_1 = arith.constant 0 : index
    %c0_2 = arith.constant 0 : index
    %1 = vector.load %arg5[%c0_1, %c0_2] : memref<4x32xf32, #tpu.memory_space<vmem>>, vector<1x32xf32>
    %c1 = arith.constant 1 : index
    %c0_3 = arith.constant 0 : index
    %2 = vector.load %arg5[%c1, %c0_3] : memref<4x32xf32, #tpu.memory_space<vmem>>, vector<1x32xf32>
    %c2 = arith.constant 2 : index
    %c0_4 = arith.constant 0 : index
    %3 = vector.load %arg5[%c2, %c0_4] : memref<4x32xf32, #tpu.memory_space<vmem>>, vector<1x32xf32>
    %c3 = arith.constant 3 : index
    %c0_5 = arith.constant 0 : index
    %4 = vector.load %arg5[%c3, %c0_5] : memref<4x32xf32, #tpu.memory_space<vmem>>, vector<1x32xf32>
    %5 = arith.truncf %0 : vector<256x32xf32> to vector<256x32xbf16>
    %c0_6 = arith.constant 0 : index
    %c0_7 = arith.constant 0 : index
    %6 = vector.load %arg2[%c0_6, %c0_7] : memref<32x32xbf16, #tpu.memory_space<vmem>>, vector<32x32xbf16>
    %cst = arith.constant dense<0.000000e+00> : vector<256x32xf32>
    %7 = tpu.matmul %5, %6, %cst {dimension_numbers = #tpu.dot_dimension_numbers<[1], [0], [0], [1], [0, 0, 1, 1], [], []>} : vector<256x32xbf16>, vector<32x32xbf16>, vector<256x32xf32> -> vector<256x32xf32>
    %8 = vector.broadcast %1 : vector<1x32xf32> to vector<256x32xf32>
    %9 = arith.addf %7, %8 : vector<256x32xf32>
    %cst_8 = arith.constant 5.000000e-01 : f32
    %10 = vector.broadcast %cst_8 : f32 to vector<256x32xf32>
    %11 = arith.mulf %10, %9 : vector<256x32xf32>
    %cst_9 = arith.constant 4.471500e-02 : f32
    %12 = vector.broadcast %cst_9 : f32 to vector<256x32xf32>
    %13 = arith.mulf %12, %9 : vector<256x32xf32>
    %14 = arith.mulf %13, %9 : vector<256x32xf32>
    %15 = arith.mulf %14, %9 : vector<256x32xf32>
    %16 = arith.addf %9, %15 : vector<256x32xf32>
    %cst_10 = arith.constant 0.797884583 : f32
    %17 = vector.broadcast %cst_10 : f32 to vector<256x32xf32>
    %18 = arith.mulf %17, %16 : vector<256x32xf32>
    %19 = math.tanh %18 : vector<256x32xf32>
    %cst_11 = arith.constant 1.000000e+00 : f32
    %20 = vector.broadcast %cst_11 : f32 to vector<256x32xf32>
    %21 = arith.addf %20, %19 : vector<256x32xf32>
    %22 = arith.mulf %11, %21 : vector<256x32xf32>
    %23 = arith.addf %0, %22 : vector<256x32xf32>
    %cst_12 = arith.constant dense<0.000000e+00> : vector<256xf32>
    %24 = vector.multi_reduction <add>, %23, %cst_12 [1] : vector<256x32xf32> to vector<256xf32>
    %25 = vector.shape_cast %24 : vector<256xf32> to vector<256x1xf32>
    %cst_13 = arith.constant 3.125000e-02 : f32
    %26 = vector.broadcast %cst_13 : f32 to vector<256x1xf32>
    %27 = arith.mulf %25, %26 : vector<256x1xf32>
    %28 = vector.broadcast %27 : vector<256x1xf32> to vector<256x32xf32>
    %29 = arith.subf %23, %28 : vector<256x32xf32>
    %30 = arith.mulf %29, %29 : vector<256x32xf32>
    %cst_14 = arith.constant dense<0.000000e+00> : vector<256xf32>
    %31 = vector.multi_reduction <add>, %30, %cst_14 [1] : vector<256x32xf32> to vector<256xf32>
    %32 = vector.shape_cast %31 : vector<256xf32> to vector<256x1xf32>
    %cst_15 = arith.constant 3.125000e-02 : f32
    %33 = vector.broadcast %cst_15 : f32 to vector<256x1xf32>
    %34 = arith.mulf %32, %33 : vector<256x1xf32>
    %cst_16 = arith.constant 9.99999974E-6 : f32
    %35 = vector.broadcast %cst_16 : f32 to vector<256x1xf32>
    %36 = arith.addf %34, %35 : vector<256x1xf32>
    %37 = math.rsqrt %36 : vector<256x1xf32>
    %38 = vector.broadcast %37 : vector<256x1xf32> to vector<256x32xf32>
    %39 = arith.mulf %29, %38 : vector<256x32xf32>
    %40 = vector.broadcast %2 : vector<1x32xf32> to vector<256x32xf32>
    %41 = arith.mulf %39, %40 : vector<256x32xf32>
    %42 = vector.broadcast %3 : vector<1x32xf32> to vector<256x32xf32>
    %43 = arith.addf %41, %42 : vector<256x32xf32>
    %44 = arith.truncf %43 : vector<256x32xf32> to vector<256x32xbf16>
    %c0_17 = arith.constant 0 : index
    %c0_18 = arith.constant 0 : index
    %45 = vector.load %arg3[%c0_17, %c0_18] : memref<32x128xbf16, #tpu.memory_space<vmem>>, vector<32x128xbf16>
    %cst_19 = arith.constant dense<0.000000e+00> : vector<256x128xf32>
    %46 = tpu.matmul %44, %45, %cst_19 {dimension_numbers = #tpu.dot_dimension_numbers<[1], [0], [0], [1], [0, 0, 1, 1], [], []>} : vector<256x32xbf16>, vector<32x128xbf16>, vector<256x128xf32> -> vector<256x128xf32>
    %c0_20 = arith.constant 0 : index
    %c0_21 = arith.constant 0 : index
    %47 = vector.load %arg6[%c0_20, %c0_21] : memref<1x128xf32, #tpu.memory_space<vmem>>, vector<1x128xf32>
    %48 = vector.broadcast %47 : vector<1x128xf32> to vector<256x128xf32>
    %49 = arith.addf %46, %48 : vector<256x128xf32>
    %cst_22 = arith.constant 5.000000e-01 : f32
    %50 = vector.broadcast %cst_22 : f32 to vector<256x128xf32>
    %51 = arith.mulf %50, %49 : vector<256x128xf32>
    %cst_23 = arith.constant 4.471500e-02 : f32
    %52 = vector.broadcast %cst_23 : f32 to vector<256x128xf32>
    %53 = arith.mulf %52, %49 : vector<256x128xf32>
    %54 = arith.mulf %53, %49 : vector<256x128xf32>
    %55 = arith.mulf %54, %49 : vector<256x128xf32>
    %56 = arith.addf %49, %55 : vector<256x128xf32>
    %cst_24 = arith.constant 0.797884583 : f32
    %57 = vector.broadcast %cst_24 : f32 to vector<256x128xf32>
    %58 = arith.mulf %57, %56 : vector<256x128xf32>
    %59 = math.tanh %58 : vector<256x128xf32>
    %cst_25 = arith.constant 1.000000e+00 : f32
    %60 = vector.broadcast %cst_25 : f32 to vector<256x128xf32>
    %61 = arith.addf %60, %59 : vector<256x128xf32>
    %62 = arith.mulf %51, %61 : vector<256x128xf32>
    %63 = arith.truncf %62 : vector<256x128xf32> to vector<256x128xbf16>
    %c0_26 = arith.constant 0 : index
    %c0_27 = arith.constant 0 : index
    %64 = vector.load %arg4[%c0_26, %c0_27] : memref<128x32xbf16, #tpu.memory_space<vmem>>, vector<128x32xbf16>
    %cst_28 = arith.constant dense<0.000000e+00> : vector<256x32xf32>
    %65 = tpu.matmul %63, %64, %cst_28 {dimension_numbers = #tpu.dot_dimension_numbers<[1], [0], [0], [1], [0, 0, 1, 1], [], []>} : vector<256x128xbf16>, vector<128x32xbf16>, vector<256x32xf32> -> vector<256x32xf32>
    %66 = vector.broadcast %4 : vector<1x32xf32> to vector<256x32xf32>
    %67 = arith.addf %65, %66 : vector<256x32xf32>
    %68 = arith.addf %67, %43 : vector<256x32xf32>
    %c0_29 = arith.constant 0 : index
    %c0_30 = arith.constant 0 : index
    %69 = vector.load %arg7[%c0_29, %c0_30] : memref<256x32xf32, #tpu.memory_space<vmem>>, vector<256x32xf32>
    tpu.vector_store %arg7[%c0_29, %c0_30], %68 {strides = array<i32>} : memref<256x32xf32, #tpu.memory_space<vmem>>, vector<256x32xf32>,
    return
  }
  func.func @transform_0(%arg0: i32) -> (i32, i32) {
    %c0_i32 = arith.constant 0 : i32
    %c0_i32_0 = arith.constant 0 : i32
    return %arg0, %c0_i32 : i32, i32
  }
  func.func @transform_1(%arg0: i32) -> (i32, i32) {
    %c0_i32 = arith.constant 0 : i32
    %c0_i32_0 = arith.constant 0 : i32
    %c0_i32_1 = arith.constant 0 : i32
    return %c0_i32, %c0_i32_0 : i32, i32
  }
  func.func @transform_2(%arg0: i32) -> (i32, i32) {
    %c0_i32 = arith.constant 0 : i32
    %c0_i32_0 = arith.constant 0 : i32
    %c0_i32_1 = arith.constant 0 : i32
    return %c0_i32, %c0_i32_0 : i32, i32
  }
  func.func @transform_3(%arg0: i32) -> (i32, i32) {
    %c0_i32 = arith.constant 0 : i32
    %c0_i32_0 = arith.constant 0 : i32
    %c0_i32_1 = arith.constant 0 : i32
    return %c0_i32, %c0_i32_0 : i32, i32
  }
  func.func @transform_4(%arg0: i32) -> (i32, i32) {
    %c0_i32 = arith.constant 0 : i32
    %c0_i32_0 = arith.constant 0 : i32
    %c0_i32_1 = arith.constant 0 : i32
    return %c0_i32, %c0_i32_0 : i32, i32
  }
  func.func @transform_5(%arg0: i32) -> (i32, i32) {
    %c0_i32 = arith.constant 0 : i32
    %c0_i32_0 = arith.constant 0 : i32
    %c0_i32_1 = arith.constant 0 : i32
    return %c0_i32, %c0_i32_0 : i32, i32
  }
  func.func @transform_6(%arg0: i32) -> (i32, i32) {
    %c0_i32 = arith.constant 0 : i32
    %c0_i32_0 = arith.constant 0 : i32
    return %arg0, %c0_i32 : i32, i32
  }
}

</mosaic_0001>

<bundles_post_ra>
// kernel: tpu_custom_call.1
= control target key start
LH: loop header
LB: loop body
LE: loop exit
PB: predicated region body
PF: predicated region fallthrough
CT: control target
= control target key end

     0   :  { %s2746_s21 = smov 0   ;;  %s4213_s0 = inlined_call_operand.vmem [shape: f32[512,32], index: 0, kind: input, shape index: {}]   ;;  %s4214_s1 = inlined_call_operand.vmem [shape: bf16[32,32], index: 1, kind: input, shape index: {}]   ;;  %s4215_s2 = inlined_call_operand.vmem [shape: bf16[32,128], index: 2, kind: input, shape index: {}]   ;;  %s4216_s3 = inlined_call_operand.vmem [shape: bf16[128,32], index: 3, kind: input, shape index: {}]   ;;  %s4217_s4 = inlined_call_operand.vmem [shape: f32[4,32], index: 4, kind: input, shape index: {}]   ;;  %s4218_s5 = inlined_call_operand.vmem [shape: f32[1,128], index: 5, kind: input, shape index: {}]   ;;  %s4219_s6 = inlined_call_operand.vmem [shape: f32[512,32], index: 6, kind: output, shape index: {}]  }
   0x1 LB: > { %s2247_s22 = sadd.s32 4294967295, %s2709_s21   ;;  %p2251_p0 = scmp.ge.s32.totalorder %s2709_s21, 1  ;;  %s2709_s21 = sphi %s2746_s21, %s16_s21  }
   0x2   : > { %p213_p1 = scmp.lt.s32.totalorder %s2709_s21, 3 }
   0x4   : > { %p214_p2 = pnand %p2251_p0, %p213_p1 }
   0x6   : > { %217 = sbr.rel (%p214_p2) target bundleno = 1137 (0x471), region = 44 }
   0xd   : > { %v2499_v0 = vld [vmem:[%s4214_s1] sm:$0xff]   ;;  %s2252_s25 = sshll.u32 %s2247_s22, 5  ;;  %v2500_v1 = vld [vmem:[%s4214_s1 + $0x8] sm:$0xff]   ;;  %vm328_vm0 = vcmask 261120  }
   0xe   : > { %p244_p3 = scmp.lt.s32.totalorder %s2252_s25, 63  ;;  %2367 = vmatprep.subr.bf16.mxu0 %v2499_v0  ;;  %2487 = vmatprep.subr.bf16.mxu1 %v2499_v0  ;;  %v2917_v50 = vld [vmem:[%s4217_s4] ss:$0 sm:$0xff] }
   0xf   : > { %2368 = vmatpush3.bf16.msra.mxu0 %v2499_v0  ;;  %2489 = vmatpush3.bf16.msra.mxu1 %v2499_v0 }
  0x10   : > { %s4356_s25 = smov (!%p244_p3, %s2252_s25), 63  ;;  %2369 = vmatprep.subr.bf16.mxu0 %v2500_v1  ;;  %2488 = vmatprep.subr.bf16.mxu1 %v2500_v1 }
  0x11   : > { %s2253_s28 = sshll.u32 %s4356_s25, 3 }
  0x12   : > { %s2768_s7 = scalar_lea.vmem %s4213_s0, %s2253_s28  ;;  %s4081_s19 = scalar_lea.vmem %s4219_s6, %s2253_s28 }
  0x13   : > { %2370 = vmatpush3.bf16.msra.mxu0 %v2500_v1  ;;  %v2771_v2 = vld [vmem:[%s2768_s7] sm:$0xff]  ;;  %v2774_v3 = vld [vmem:[%s2768_s7 + $0x8] sm:$0xff]  ;;  %v2777_v4 = vld [vmem:[%s2768_s7 + $0x10] sm:$0xff]  ;;  %2490 = vmatpush3.bf16.msra.mxu1 %v2500_v1 }
  0x14   : > { %v292_v5 = vpack.c.bf16 %v2774_v3, %v2771_v2  ;;  %v2782_v6 = vld [vmem:[%s2768_s7 + $0x18] sm:$0xff]  ;;  %v2785_v7 = vld [vmem:[%s2768_s7 + $0x20] sm:$0xff]  ;;  %v2788_v8 = vld [vmem:[%s2768_s7 + $0x28] sm:$0xff] }
  0x15   : > { %v293_v9 = vpack.c.bf16 %v2782_v6, %v2777_v4  ;;  %v294_v10 = vpack.c.bf16 %v2788_v8, %v2785_v7  ;;  %v2795_v11 = vld [vmem:[%s2768_s7 + $0x80] sm:$0xff]  ;;  %v2799_v12 = vld [vmem:[%s2768_s7 + $0x88] sm:$0xff]  ;;  %v2802_v13 = vld [vmem:[%s2768_s7 + $0x90] sm:$0xff] }
  0x16   : > { %4265 = vst [vmem:[#allocation2_spill] sm:$0xff] %v2795_v11  ;;  %2371 = vmatprep.mubr.msk.bf16.mxu0 %vm328_vm0, %v292_v5  ;;  %4266 = vst [vmem:[#allocation3_spill] sm:$0xff] %v2799_v12  ;;  %v2805_v14 = vld [vmem:[%s2768_s7 + $0x98] sm:$0xff]  ;;  %v2809_v15 = vld [vmem:[%s2768_s7 + $0x30] sm:$0xff]  ;;  %v300_v16 = vpack.c.bf16 %v2799_v12, %v2795_v11 }
  0x17   : > { %4267 = vst [vmem:[#allocation4_spill] sm:$0xff] %v2802_v13  ;;  %4268 = vst [vmem:[#allocation5_spill] sm:$0xff] %v2805_v14  ;;  %2372 = vmatmul.mubr.msk.bf16.vlgmr.msra.gmra.mrb[0].mxu0 %vm328_vm0, %v293_v9  ;;  %v301_v17 = vpack.c.bf16 %v2805_v14, %v2802_v13  ;;  %v2817_v18 = vld [vmem:[%s2768_s7 + $0x38] sm:$0xff]  ;;  %v2820_v19 = vld [vmem:[%s2768_s7 + $0xa0] sm:$0xff] }
  0x18   : > { %2375 = vmatprep.mubr.msk.bf16.mxu0 %vm328_vm0, %v294_v10  ;;  %4269 = vst [vmem:[#allocation6_spill] sm:$0xff] %v2820_v19  ;;  %v2823_v20 = vld [vmem:[%s2768_s7 + $0xa8] sm:$0xff]  ;;  %2387 = vmatprep.mubr.msk.bf16.mxu1 %vm328_vm0, %v300_v16  ;;  %v2827_v21 = vld [vmem:[%s2768_s7 + $0x40] sm:$0xff]  ;;  %v295_v24 = vpack.c.bf16 %v2817_v18, %v2809_v15  ;;  %v2839_v25 = vld [vmem:[%s2768_s7 + $0xb0] sm:$0xff] }
  0x19   : > { %4270 = vst [vmem:[#allocation7_spill] sm:$0xff] %v2823_v20  ;;  %v2830_v22 = vld [vmem:[%s2768_s7 + $0x48] sm:$0xff]  ;;  %v302_v23 = vpack.c.bf16 %v2823_v20, %v2820_v19  ;;  %2388 = vmatmul.mubr.msk.bf16.vlgmr.msra.gmra.mrb[0].mxu1 %vm328_vm0, %v301_v17  ;;  %4272 = vst [vmem:[#allocation9_spill] sm:$0xff] %v2839_v25  ;;  %v2842_v26 = vld [vmem:[%s2768_s7 + $0xb8] sm:$0xff] }
  0x1a   : > { %4271 = vst [vmem:[#allocation8_spill] sm:$0xff] %v2830_v22  ;;  %4273 = vst [vmem:[#allocation10_spill] sm:$0xff] %v2842_v26  ;;  %v296_v27 = vpack.c.bf16 %v2830_v22, %v2827_v21  ;;  %v2847_v28 = vld [vmem:[%s2768_s7 + $0xc0] sm:$0xff]  ;;  %v2850_v29 = vld [vmem:[%s2768_s7 + $0xc8] sm:$0xff]  ;;  %v303_v30 = vpack.c.bf16 %v2842_v26, %v2839_v25 }
  0x1b   : > { %2391 = vmatprep.mubr.msk.bf16.mxu1 %vm328_vm0, %v302_v23  ;;  %4274 = vst [vmem:[#allocation11_spill] sm:$0xff] %v2847_v28  ;;  %4275 = vst [vmem:[#allocation12_spill] sm:$0xff] %v2850_v29  ;;  %v304_v31 = vpack.c.bf16 %v2850_v29, %v2847_v28  ;;  %v2859_v32 = vld [vmem:[%s2768_s7 + $0x50] sm:$0xff]  ;;  %v2862_v33 = vld [vmem:[%s2768_s7 + $0x58] sm:$0xff] }
  0x1c   : > { %4276 = vst [vmem:[#allocation13_spill] sm:$0xff] %v2859_v32  ;;  %4277 = vst [vmem:[#allocation14_spill] sm:$0xff] %v2862_v33  ;;  %v2865_v34 = vld [vmem:[%s2768_s7 + $0x60] sm:$0xff]  ;;  %v2868_v35 = vld [vmem:[%s2768_s7 + $0x68] sm:$0xff]  ;;  %v297_v36 = vpack.c.bf16 %v2862_v33, %v2859_v32 }
  0x1d   : > { %4278 = vst [vmem:[#allocation15_spill] sm:$0xff] %v2865_v34  ;;  %4279 = vst [vmem:[#allocation16_spill] sm:$0xff] %v2868_v35  ;;  %v2875_v37 = vld [vmem:[%s2768_s7 + $0xd0] sm:$0xff]  ;;  %v2878_v38 = vld [vmem:[%s2768_s7 + $0xd8] sm:$0xff]  ;;  %v298_v39 = vpack.c.bf16 %v2868_v35, %v2865_v34 }
  0x1e   : > { %4280 = vst [vmem:[#allocation17_spill] sm:$0xff] %v2875_v37  ;;  %4281 = vst [vmem:[#allocation18_spill] sm:$0xff] %v2878_v38  ;;  %v2883_v40 = vld [vmem:[%s2768_s7 + $0xe0] sm:$0xff]  ;;  %v2886_v41 = vld [vmem:[%s2768_s7 + $0xe8] sm:$0xff]  ;;  %v305_v42 = vpack.c.bf16 %v2878_v38, %v2875_v37 }
  0x1f   : > { %2376 = vmatmul.mubr.msk.bf16.gmra.mrb[4].mxu0 %vm328_vm0, %v295_v24  ;;  %4282 = vst [vmem:[#allocation19_spill] sm:$0xff] %v2883_v40  ;;  %4283 = vst [vmem:[#allocation20_spill] sm:$0xff] %v2886_v41  ;;  %v306_v43 = vpack.c.bf16 %v2886_v41, %v2883_v40  ;;  %v2895_v44 = vld [vmem:[%s2768_s7 + $0x70] sm:$0xff]  ;;  %v2898_v45 = vld [vmem:[%s2768_s7 + $0x78] sm:$0xff] }
  0x20   : > { %2379 = vmatprep.mubr.msk.bf16.mxu0 %vm328_vm0, %v296_v27  ;;  %4284 = vst [vmem:[#allocation21_spill] sm:$0xff] %v2895_v44  ;;  %4285 = vst [vmem:[#allocation22_spill] sm:$0xff] %v2898_v45  ;;  %v299_v46 = vpack.c.bf16 %v2898_v45, %v2895_v44  ;;  %v2905_v47 = vld [vmem:[%s2768_s7 + $0xf0] sm:$0xff]  ;;  %v2908_v48 = vld [vmem:[%s2768_s7 + $0xf8] sm:$0xff] }
  0x21   : > { %2392 = vmatmul.mubr.msk.bf16.gmra.mrb[4].mxu1 %vm328_vm0, %v303_v30  ;;  %4286 = vst [vmem:[#allocation23_spill] sm:$0xff] %v2905_v47  ;;  %4287 = vst [vmem:[#allocation24_spill] sm:$0xff] %v2908_v48  ;;  %v307_v49 = vpack.c.bf16 %v2908_v48, %v2905_v47 }
  0x22   : > { %2395 = vmatprep.mubr.msk.bf16.mxu1 %vm328_vm0, %v304_v31 }
  0x27   : > { %2380 = vmatmul.mubr.msk.bf16.gmra.mrb[8].mxu0 %vm328_vm0, %v297_v36 }
  0x28   : > { %2383 = vmatprep.mubr.msk.bf16.mxu0 %vm328_vm0, %v298_v39 }
  0x29   : > { %2396 = vmatmul.mubr.msk.bf16.gmra.mrb[8].mxu1 %vm328_vm0, %v305_v42 }
  0x2a   : > { %2399 = vmatprep.mubr.msk.bf16.mxu1 %vm328_vm0, %v306_v43 }
  0x2f   : > { %2384 = vmatmul.mubr.msk.bf16.gmra.mrb[12].mxu0 %vm328_vm0, %v299_v46 }
  0x31   : > { %2400 = vmatmul.mubr.msk.bf16.gmra.mrb[12].mxu1 %vm328_vm0, %v307_v49 }
  0xea   : > { %v2373_v51 = vpop.f32.mrb[0].mxu0 }
  0xeb   : > { %v420_v52 = vadd.f32 %v2373_v51, %v2917_v50  ;;  %v411_v53 = vpop.f32.mrb[1].mxu0 }
  0xec   : > { %v412_v54 = vadd.f32 %v2917_v50, %v411_v53  ;;  %v2374_v55 = vpop.f32.mrb[2].mxu0  ;;  %v2389_v59 = vpop.f32.mrb[0].mxu1 }
  0xed   : > { %v572_v56 = vmul.f32 0.044715, %v420_v52  ;;  %v423_v57 = vadd.f32 %v2374_v55, %v2917_v50  ;;  %v414_v58 = vpop.f32.mrb[3].mxu0  ;;  %v475_v61 = vpop.f32.mrb[1].mxu1  ;;  %v2926_v9 = vadd.f32 %v2389_v59, %v2917_v50  ;;  %v2937_v39 = vmul.f32 0.5, %v420_v52 }
  0xee   : > { %v570_v60 = vmul.f32 0.044715, %v412_v54  ;;  %v2390_v0 = vpop.f32.mrb[2].mxu1  ;;  %v2923_v5 = vadd.f32 %v2917_v50, %v414_v58  ;;  %v2929_v16 = vadd.f32 %v2917_v50, %v475_v61  ;;  %v2939_v43 = vmul.f32 0.5, %v412_v54 }
  0xef   : > { %v604_v62 = vmul.f32 %v572_v56, %v420_v52  ;;  %v573_v63 = vmul.f32 0.044715, %v423_v57  ;;  %v478_v10 = vpop.f32.mrb[3].mxu1  ;;  %v2932_v27 = vadd.f32 %v2390_v0, %v2917_v50  ;;  %v588_v53 = vmul.f32 0.044715, %v2926_v9 }
  0xf0   : > { %v602_v1 = vmul.f32 %v570_v60, %v412_v54  ;;  %v2935_v36 = vadd.f32 %v2917_v50, %v478_v10  ;;  %v571_v46 = vmul.f32 0.044715, %v2923_v5 }
  0xf1   : > { %v636_v17 = vmul.f32 %v604_v62, %v420_v52  ;;  %v605_v23 = vmul.f32 %v573_v63, %v423_v57  ;;  %v589_v62 = vmul.f32 0.044715, %v2932_v27 }
  0xf2   : > { %v2377_v24 = vpop.f32.mrb[4].mxu0  ;;  %v634_v30 = vmul.f32 %v602_v1, %v412_v54  ;;  %v2954_v1 = vmul.f32 0.5, %v423_v57 }
  0xf3   : > { %v427_v31 = vpop.f32.mrb[5].mxu0  ;;  %v668_v42 = vadd.f32 %v636_v17, %v420_v52  ;;  %v2943_v49 = vadd.f32 %v2377_v24, %v2917_v50  ;;  %v586_v52 = vmul.f32 0.044715, %v2929_v16  ;;  %v637_v10 = vmul.f32 %v605_v23, %v423_v57 }
  0xf4   : > { %v2378_v51 = vpop.f32.mrb[6].mxu0  ;;  %v666_v55 = vadd.f32 %v634_v30, %v412_v54  ;;  %v2947_v56 = vadd.f32 %v2917_v50, %v427_v31  ;;  %v2393_v60 = vpop.f32.mrb[4].mxu1  ;;  %v587_v17 = vmul.f32 0.044715, %v2935_v36  ;;  %v603_v31 = vmul.f32 %v571_v46, %v2923_v5 }
  0xf5   : > { %v2950_v58 = vadd.f32 %v2378_v51, %v2917_v50  ;;  %v430_v59 = vpop.f32.mrb[7].mxu0  ;;  %v700_v61 = vmul.f32 0.7978846, %v668_v42  ;;  %v491_v63 = vpop.f32.mrb[5].mxu1  ;;  %v2961_v24 = vadd.f32 %v2393_v60, %v2917_v50  ;;  %v576_v42 = vmul.f32 0.044715, %v2943_v49 }
  0xf6   : > { %v698_v0 = vmul.f32 0.7978846, %v666_v55  ;;  %v2957_v54 = vadd.f32 %v2917_v50, %v430_v59  ;;  %v2394_v30 = vpop.f32.mrb[6].mxu1  ;;  %v2966_v51 = vadd.f32 %v2917_v50, %v491_v63  ;;  %v574_v59 = vmul.f32 0.044715, %v2947_v56 }
  0xf7   : > { %4288 = vst [vmem:[#allocation25_spill] sm:$0xff] %v2961_v24  ;;  %2511 = vtanh.f32 %v700_v61  ;;  %v2969_v55 = vadd.f32 %v2394_v30, %v2917_v50  ;;  %v494_v23 = vpop.f32.mrb[7].mxu1  ;;  %v577_v48 = vmul.f32 0.044715, %v2950_v58  ;;  %v2974_v60 = vmul.f32 %v588_v53, %v2926_v9 }
  0xf8   : > { %4289 = vst [vmem:[#allocation26_spill] sm:$0xff] %v2966_v51  ;;  %2513 = vtanh.f32 %v698_v0  ;;  %v2977_v61 = vmul.f32 %v586_v52, %v2929_v16  ;;  %v2980_v46 = vmul.f32 %v589_v62, %v2932_v27  ;;  %v2983_v47 = vadd.f32 %v2917_v50, %v494_v23 }
  0xf9   : > { %4290 = vst [vmem:[#allocation27_spill] sm:$0xff] %v2969_v55  ;;  %v669_v30 = vadd.f32 %v637_v10, %v423_v57  ;;  %v575_v41 = vmul.f32 0.044715, %v2957_v54  ;;  %v2987_v40 = vmul.f32 %v587_v17, %v2935_v36  ;;  %v592_v52 = vmul.f32 0.044715, %v2961_v24 }
  0xfa   : > { %v2381_v63 = vpop.f32.mrb[8].mxu0  ;;  %4291 = vst [vmem:[#allocation28_spill] sm:$0xff] %v2983_v47  ;;  %v2994_v38 = vmul.f32 %v576_v42, %v2943_v49  ;;  %v590_v37 = vmul.f32 0.044715, %v2966_v51  ;;  %v635_v57 = vmul.f32 %v603_v31, %v2923_v5  ;;  %v606_v10 = vmul.f32 %v574_v59, %v2947_v56 }
  0xfb   : > { %v2990_v53 = vadd.f32 %v2381_v63, %v2917_v50  ;;  %v443_v0 = vpop.f32.mrb[9].mxu0  ;;  %v701_v23 = vmul.f32 0.7978846, %v669_v30  ;;  %v3000_v17 = vmul.f32 %v577_v48, %v2950_v58  ;;  %v593_v26 = vmul.f32 0.044715, %v2969_v55 }
  0xfc   : > { %v2382_v62 = vpop.f32.mrb[10].mxu0  ;;  %v3003_v63 = vadd.f32 %v2917_v50, %v443_v0  ;;  %v2397_v42 = vpop.f32.mrb[8].mxu1  ;;  %v591_v25 = vmul.f32 0.044715, %v2983_v47  ;;  %v667_v20 = vadd.f32 %v635_v57, %v2923_v5  ;;  %v3022_v19 = vmul.f32 %v575_v41, %v2957_v54 }
  0xfd   : > { %v3006_v29 = vadd.f32 %v2382_v62, %v2917_v50  ;;  %v446_v28 = vpop.f32.mrb[11].mxu0  ;;  %v3011_v30 = vadd.f32 %v2397_v42, %v2917_v50  ;;  %v507_v31 = vpop.f32.mrb[9].mxu1  ;;  %2515 = vtanh.f32 %v701_v23  ;;  %v580_v48 = vmul.f32 0.044715, %v2990_v53 }
  0xfe   : > { %v3015_v59 = vadd.f32 %v2917_v50, %v446_v28  ;;  %v3018_v0 = vadd.f32 %v2917_v50, %v507_v31  ;;  %v2398_v62 = vpop.f32.mrb[10].mxu1  ;;  %v3025_v14 = vmul.f32 %v592_v52, %v2961_v24  ;;  %v3028_v42 = vmul.f32 %v590_v37, %v2966_v51 }
  0xff   : > { %v3031_v23 = vadd.f32 %v2398_v62, %v2917_v50  ;;  %v510_v28 = vpop.f32.mrb[11].mxu1  ;;  %v578_v31 = vmul.f32 0.044715, %v3003_v63  ;;  %v581_v12 = vmul.f32 0.044715, %v3006_v29  ;;  %v3039_v11 = vmul.f32 %v593_v26, %v2969_v55 }
 0x100   : > { %4292 = vst [vmem:[#allocation29_spill] sm:$0xff] %v3025_v14  ;;  %4293 = vst [vmem:[#allocation30_spill] sm:$0xff] %v3028_v42  ;;  %v3036_v57 = vadd.f32 %v2917_v50, %v510_v28  ;;  %v699_v41 = vmul.f32 0.7978846, %v667_v20  ;;  %v3042_v52 = vmul.f32 %v591_v25, %v2983_v47  ;;  %v3045_v62 = vmul.f32 0.5, %v2923_v5 }
 0x101   : > { %v2512_v13 = vpop.eup %2511  ;;  %4294 = vst [vmem:[#allocation31_spill] sm:$0xff] %v3039_v11  ;;  %v3048_v24 = vmul.f32 %v580_v48, %v2990_v53  ;;  %v579_v44 = vmul.f32 0.044715, %v3015_v59  ;;  %v3052_v20 = vmul.f32 0.5, %v2947_v56  ;;  %v610_v55 = vmul.f32 %v578_v31, %v3003_v63 }
 0x102   : > { %4295 = vst [vmem:[#allocation32_spill] sm:$0xff] %v3042_v52  ;;  %v2385_v37 = vpop.f32.mrb[12].mxu0  ;;  %v764_v45 = vadd.f32 1.0, %v2512_v13  ;;  %v2514_v14 = vpop.eup %2513  ;;  %2517 = vtanh.f32 %v699_v41  ;;  %v596_v13 = vmul.f32 0.044715, %v3011_v30  ;;  %v3061_v48 = vmul.f32 %v581_v12, %v3006_v29 }
 0x103   : > { %v459_v28 = vpop.f32.mrb[13].mxu0  ;;  %v3055_v26 = vadd.f32 %v2385_v37, %v2917_v50  ;;  %v762_v11 = vadd.f32 1.0, %v2514_v14  ;;  %v594_v41 = vmul.f32 0.044715, %v3018_v0  ;;  %v597_v47 = vmul.f32 0.044715, %v3031_v23 }
 0x104   : > { %v2386_v25 = vpop.f32.mrb[14].mxu0  ;;  %v796_v5 = vmul.f32 %v764_v45, %v2937_v39  ;;  %v2401_v35 = vpop.f32.mrb[12].mxu1  ;;  %v3066_v37 = vadd.f32 %v2917_v50, %v459_v28  ;;  %v595_v42 = vmul.f32 0.044715, %v3036_v57  ;;  %v638_v28 = vmul.f32 %v606_v10, %v2947_v56 }
 0x105   : > { %v462_v52 = vpop.f32.mrb[15].mxu0  ;;  %v794_v14 = vmul.f32 %v762_v11, %v2939_v43  ;;  %v523_v45 = vpop.f32.mrb[13].mxu1  ;;  %v3074_v12 = vadd.f32 %v2386_v25, %v2917_v50  ;;  %v3077_v39 = vadd.f32 %v2401_v35, %v2917_v50  ;;  %v584_v32 = vmul.f32 0.044715, %v3055_v26 }
 0x106   : > { %v3070_v51 = vadd.f32 %v796_v5, %v2777_v4  ;;  %v3080_v31 = vadd.f32 %v2917_v50, %v523_v45  ;;  %v2402_v34 = vpop.f32.mrb[14].mxu1  ;;  %v3085_v4 = vadd.f32 %v2917_v50, %v462_v52  ;;  %v611_v25 = vmul.f32 %v579_v44, %v3015_v59 }
 0x107   : > { %v2516_v33 = vpop.eup %2515  ;;  %v3090_v43 = vadd.f32 %v794_v14, %v2771_v2  ;;  %v526_v35 = vpop.f32.mrb[15].mxu1  ;;  %v3094_v5 = vmul.f32 %v596_v13, %v3011_v30  ;;  %v3097_v10 = vmul.f32 %v594_v41, %v3018_v0  ;;  %v582_v52 = vmul.f32 0.044715, %v3066_v37 }
 0x108   : > { %4296 = vst [vmem:[#allocation33_spill] sm:$0xff] %v3070_v51  ;;  %v864_v11 = vsel %vm328_vm0, %v3070_v51, 0.0  ;;  %v765_v45 = vadd.f32 1.0, %v2516_v33  ;;  %v3103_v51 = vadd.f32 %v2402_v34, %v2917_v50  ;;  %v3106_v2 = vadd.f32 %v2917_v50, %v526_v35 }
 0x109   : > { %4297 = vst [vmem:[#allocation34_spill] sm:$0xff] %v3090_v43  ;;  %865 = vadd.xlane.f32.xlu1 %v864_v11  ;;  %v858_v22 = vsel %vm328_vm0, %v3090_v43, 0.0  ;;  %v585_v44 = vmul.f32 0.044715, %v3074_v12  ;;  %v3110_v13 = vmul.f32 %v597_v47, %v3031_v23  ;;  %v670_v33 = vadd.f32 %v638_v28, %v2947_v56 }
 0x10a   : > { %859 = vadd.xlane.f32.xlu0 %v858_v22  ;;  %v797_v41 = vmul.f32 %v765_v45, %v2954_v1  ;;  %v616_v14 = vmul.f32 %v584_v32, %v3055_v26  ;;  %v583_v11 = vmul.f32 0.044715, %v3085_v4  ;;  %v3117_v34 = vmul.f32 %v595_v42, %v3036_v57 }
 0x10b   : > { %v639_v50 = vmul.f32 %v3022_v19, %v2957_v54  ;;  %v600_v43 = vmul.f32 0.044715, %v3077_v39  ;;  %v702_v22 = vmul.f32 0.7978846, %v670_v33  ;;  %v640_v56 = vmul.f32 %v2994_v38, %v2943_v49 }
 0x10c   : > { %v2518_v35 = vpop.eup %2517  ;;  %v3123_v47 = vadd.f32 %v797_v41, %v2782_v6  ;;  %v614_v32 = vmul.f32 %v582_v52, %v3066_v37  ;;  %v598_v1 = vmul.f32 0.044715, %v3080_v31  ;;  %v617_v45 = vmul.f32 %v585_v44, %v3074_v12 }
 0x10d   : > { %v763_v28 = vadd.f32 1.0, %v2518_v35  ;;  %v671_v42 = vadd.f32 %v639_v50, %v2957_v54  ;;  %2519 = vtanh.f32 %v702_v22  ;;  %v672_v6 = vadd.f32 %v640_v56, %v2943_v49 }
 0x10e   : > { %4298 = vst [vmem:[#allocation35_spill] sm:$0xff] %v3123_v47  ;;  %v867_v19 = vsel %vm328_vm0, %v3123_v47, 0.0  ;;  %v615_v41 = vmul.f32 %v583_v11, %v3085_v4  ;;  %v641_v52 = vmul.f32 %v3000_v17, %v2950_v58  ;;  %v3139_v35 = vmul.f32 %v600_v43, %v3077_v39 }
 0x10f   : > { %868 = vadd.xlane.f32.xlu1 %v867_v19  ;;  %v795_v38 = vmul.f32 %v763_v28, %v3045_v62  ;;  %v703_v33 = vmul.f32 0.7978846, %v671_v42  ;;  %v704_v50 = vmul.f32 0.7978846, %v672_v6  ;;  %v642_v44 = vmul.f32 %v610_v55, %v3003_v63 }
 0x110   : > { %v643_v47 = vmul.f32 %v611_v25, %v3015_v59  ;;  %v3144_v22 = vmul.f32 %v598_v1, %v3080_v31  ;;  %v673_v62 = vadd.f32 %v641_v52, %v2950_v58  ;;  %v644_v56 = vmul.f32 %v3048_v24, %v2990_v53 }
 0x111   : > { %v3147_v11 = vadd.f32 %v795_v38, %v2774_v3  ;;  %2521 = vtanh.f32 %v703_v33  ;;  %v674_v17 = vadd.f32 %v642_v44, %v3003_v63  ;;  %v3157_v25 = vmul.f32 0.044715, %v3106_v2 }
 0x112   : > { %2523 = vtanh.f32 %v704_v50  ;;  %v675_v43 = vadd.f32 %v643_v47, %v3015_v59  ;;  %v705_v1 = vmul.f32 0.7978846, %v673_v62  ;;  %v645_v3 = vmul.f32 %v3061_v48, %v3006_v29 }
 0x113   : > { %v861_v55 = vsel %vm328_vm0, %v3147_v11, 0.0  ;;  %v543_v28 = vmul.f32 0.5, %v2957_v54  ;;  %v706_v42 = vmul.f32 0.7978846, %v674_v17  ;;  %v676_v47 = vadd.f32 %v644_v56, %v2990_v53 }
 0x114   : > { %862 = vadd.xlane.f32.xlu0 %v861_v55  ;;  %v707_v19 = vmul.f32 0.7978846, %v675_v43  ;;  %v544_v6 = vmul.f32 0.5, %v2943_v49  ;;  %2525 = vtanh.f32 %v705_v1  ;;  %v677_v24 = vadd.f32 %v645_v3, %v3006_v29 }
 0x115   : > { %v646_v38 = vmul.f32 %v614_v32, %v3066_v37  ;;  %v545_v33 = vmul.f32 0.5, %v2950_v58  ;;  %2527 = vtanh.f32 %v706_v42  ;;  %v708_v52 = vmul.f32 0.7978846, %v676_v47 }
 0x116   : > { %v647_v48 = vmul.f32 %v615_v41, %v3085_v4  ;;  %2529 = vtanh.f32 %v707_v19  ;;  %v709_v50 = vmul.f32 0.7978846, %v677_v24  ;;  %v648_v44 = vmul.f32 %v616_v14, %v3055_v26 }
 0x117   : > { %v678_v54 = vadd.f32 %v646_v38, %v3066_v37  ;;  %v2520_v62 = vpop.eup %2519  ;;  %v546_v49 = vmul.f32 0.5, %v3003_v63  ;;  %2531 = vtanh.f32 %v708_v52  ;;  %v649_v32 = vmul.f32 %v617_v45, %v3074_v12 }
 0x118   : > { %v679_v17 = vadd.f32 %v647_v48, %v3085_v4  ;;  %v766_v43 = vadd.f32 1.0, %v2520_v62  ;;  %2533 = vtanh.f32 %v709_v50  ;;  %v680_v56 = vadd.f32 %v648_v44, %v3055_v26 }
 0x119   : > { %v710_v58 = vmul.f32 0.7978846, %v678_v54  ;;  %v547_v41 = vmul.f32 0.5, %v3015_v59  ;;  %v681_v1 = vadd.f32 %v649_v32, %v3074_v12  ;;  %v650_v14 = vmul.f32 %v2977_v61, %v2929_v16 }
 0x11a   : > { %v711_v55 = vmul.f32 0.7978846, %v679_v17  ;;  %v798_v63 = vmul.f32 %v766_v43, %v3052_v20  ;;  %v548_v42 = vmul.f32 0.5, %v2990_v53  ;;  %v712_v45 = vmul.f32 0.7978846, %v680_v56 }
 0x11b   : > { %v2522_v3 = vpop.eup %2521  ;;  %2535 = vtanh.f32 %v710_v58  ;;  %v713_v24 = vmul.f32 0.7978846, %v681_v1  ;;  %v682_v38 = vadd.f32 %v650_v14, %v2929_v16  ;;  %v651_v61 = vmul.f32 %v2987_v40, %v2935_v36 }
 0x11c   : > { %v2524_v19 = vpop.eup %2523  ;;  %v767_v47 = vadd.f32 1.0, %v2522_v3  ;;  %2537 = vtanh.f32 %v711_v55  ;;  %v3182_v59 = vadd.f32 %v798_v63, %v2785_v7  ;;  %v549_v20 = vmul.f32 0.5, %v3006_v29 }
 0x11d   : > { %v768_v52 = vadd.f32 1.0, %v2524_v19  ;;  %2539 = vtanh.f32 %v712_v45  ;;  %v714_v53 = vmul.f32 0.7978846, %v682_v38  ;;  %v683_v62 = vadd.f32 %v651_v61, %v2935_v36 }
 0x11e   : > { %v799_v48 = vmul.f32 %v767_v47, %v543_v28  ;;  %2541 = vtanh.f32 %v713_v24  ;;  %v2526_v50 = vpop.eup %2525  ;;  %v870_v54 = vsel %vm328_vm0, %v3182_v59, 0.0  ;;  %v652_v7 = vmul.f32 %v2974_v60, %v2926_v9 }
 0x11f   : > { %v800_v44 = vmul.f32 %v768_v52, %v544_v6  ;;  %v2528_v17 = vpop.eup %2527  ;;  %871 = vadd.xlane.f32.xlu0 %v870_v54  ;;  %v769_v40 = vadd.f32 1.0, %v2526_v50  ;;  %v550_v29 = vmul.f32 0.5, %v3066_v37  ;;  %2543 = vtanh.f32 %v714_v53  ;;  %v4299_v53 = vld [vmem:[#allocation8_spill] sm:$0xff] }
 0x120   : > { %v3193_v32 = vadd.f32 %v799_v48, %v2788_v8  ;;  %v2530_v28 = vpop.eup %2529  ;;  %v770_v58 = vadd.f32 1.0, %v2528_v17  ;;  %v715_v6 = vmul.f32 0.7978846, %v683_v62  ;;  %v684_v56 = vadd.f32 %v652_v7, %v2926_v9 }
 0x121   : > { %v3197_v43 = vadd.f32 %v800_v44, %v2809_v15  ;;  %v2532_v55 = vpop.eup %2531  ;;  %v801_v1 = vmul.f32 %v769_v40, %v545_v33  ;;  %v771_v14 = vadd.f32 1.0, %v2530_v28  ;;  %v653_v8 = vmul.f32 %v2980_v46, %v2932_v27  ;;  %v4300_v44 = vld [vmem:[#allocation13_spill] sm:$0xff] }
 0x122   : > { %v873_v60 = vsel %vm328_vm0, %v3193_v32, 0.0  ;;  %v2534_v3 = vpop.eup %2533  ;;  %v802_v15 = vmul.f32 %v770_v58, %v546_v49  ;;  %v772_v63 = vadd.f32 1.0, %v2532_v55  ;;  %2545 = vtanh.f32 %v715_v6 }
 0x123   : > { %874 = vadd.xlane.f32.xlu1 %v873_v60  ;;  %v876_v37 = vsel %vm328_vm0, %v3197_v43, 0.0  ;;  %v3207_v45 = vadd.f32 %v801_v1, %v2817_v18  ;;  %v803_v19 = vmul.f32 %v771_v14, %v547_v41  ;;  %v773_v47 = vadd.f32 1.0, %v2534_v3  ;;  %v4301_v60 = vld [vmem:[#allocation14_spill] sm:$0xff]  ;;  %v4302_v14 = vld [vmem:[#allocation15_spill] sm:$0xff] }
 0x124   : > { %877 = vadd.xlane.f32.xlu0 %v876_v37  ;;  %v716_v24 = vmul.f32 0.7978846, %v684_v56  ;;  %v3210_v38 = vadd.f32 %v802_v15, %v2827_v21  ;;  %v804_v46 = vmul.f32 %v772_v63, %v548_v42  ;;  %v551_v52 = vmul.f32 0.5, %v3085_v4  ;;  %v4303_v37 = vld [vmem:[#allocation26_spill] sm:$0xff] }
 0x125   : > { %v2536_v33 = vpop.eup %2535  ;;  %v685_v61 = vadd.f32 %v653_v8, %v2932_v27  ;;  %v879_v49 = vsel %vm328_vm0, %v3207_v45, 0.0  ;;  %v3217_v50 = vadd.f32 %v803_v19, %v4299_v53  ;;  %v805_v18 = vmul.f32 %v773_v47, %v549_v20  ;;  %v4304_v15 = vld [vmem:[#allocation30_spill] sm:$0xff]  ;;  %v4305_v47 = vld [vmem:[#allocation16_spill] sm:$0xff] }
 0x126   : > { %v2538_v48 = vpop.eup %2537  ;;  %v774_v41 = vadd.f32 1.0, %v2536_v33  ;;  %v882_v21 = vsel %vm328_vm0, %v3210_v38, 0.0  ;;  %v3222_v42 = vadd.f32 %v804_v46, %v4300_v44  ;;  %2547 = vtanh.f32 %v716_v24  ;;  %v4307_v53 = vld [vmem:[#allocation32_spill] sm:$0xff] }
 0x127   : > { %v2540_v54 = vpop.eup %2539  ;;  %880 = vadd.xlane.f32.xlu1 %v879_v49  ;;  %v775_v4 = vadd.f32 1.0, %v2538_v48  ;;  %v885_v7 = vsel %vm328_vm0, %v3217_v50, 0.0  ;;  %v552_v40 = vmul.f32 0.5, %v3055_v26  ;;  %v553_v58 = vmul.f32 0.5, %v3074_v12  ;;  %v4306_v49 = vld [vmem:[#allocation28_spill] sm:$0xff] }
 0x128   : > { %v2542_v62 = vpop.eup %2541  ;;  %883 = vadd.xlane.f32.xlu0 %v882_v21  ;;  %v806_v17 = vmul.f32 %v774_v41, %v550_v29  ;;  %v776_v20 = vadd.f32 1.0, %v2540_v54  ;;  %v717_v56 = vmul.f32 0.7978846, %v685_v61  ;;  %v3229_v1 = vadd.f32 %v805_v18, %v4301_v60  ;;  %v4308_v54 = vld [vmem:[#allocation21_spill] sm:$0xff] }
 0x129   : > { %v807_v28 = vmul.f32 %v775_v4, %v551_v52  ;;  %v777_v6 = vadd.f32 1.0, %v2542_v62  ;;  %v2544_v55 = vpop.eup %2543  ;;  %v654_v63 = vmul.f32 %v4304_v15, %v4303_v37  ;;  %v888_v26 = vsel %vm328_vm0, %v3222_v42, 0.0 }
 0x12a   : > { %v3232_v8 = vadd.f32 %v806_v17, %v4302_v14  ;;  %v808_v3 = vmul.f32 %v776_v20, %v552_v40  ;;  %v554_v29 = vmul.f32 0.5, %v2929_v16  ;;  %v778_v12 = vadd.f32 1.0, %v2544_v55  ;;  %v4309_v17 = vld [vmem:[#allocation25_spill] sm:$0xff] }
 0x12b   : > { %886 = vadd.xlane.f32.xlu1 %v885_v7  ;;  %2549 = vtanh.f32 %v717_v56  ;;  %v601_v19 = vmul.f32 0.044715, %v3103_v51  ;;  %v3241_v24 = vadd.f32 %v807_v28, %v4305_v47  ;;  %v809_v33 = vmul.f32 %v777_v6, %v553_v58  ;;  %v4310_v40 = vld [vmem:[#allocation29_spill] sm:$0xff]  ;;  %v4311_v28 = vld [vmem:[#allocation22_spill] sm:$0xff]  ;;  %v4312_v6 = vld [vmem:[#allocation27_spill] sm:$0xff] }
 0x12c   : > { %889 = vadd.xlane.f32.xlu0 %v888_v26  ;;  %v686_v46 = vadd.f32 %v654_v63, %v4303_v37  ;;  %v2546_v52 = vpop.eup %2545  ;;  %v3246_v61 = vmul.f32 %v3157_v25, %v3106_v2  ;;  %v894_v48 = vsel %vm328_vm0, %v3232_v8, 0.0  ;;  %v555_v16 = vmul.f32 0.5, %v2935_v36  ;;  %v4313_v56 = vld [vmem:[#allocation31_spill] sm:$0xff]  ;;  %v4314_v47 = vld [vmem:[#allocation2_spill] sm:$0xff] }
 0x12d   : > { %v655_v18 = vmul.f32 %v4307_v53, %v4306_v49  ;;  %v891_v41 = vsel %vm328_vm0, %v3229_v1, 0.0  ;;  %v3256_v21 = vadd.f32 %v808_v3, %v4308_v54  ;;  %v779_v44 = vadd.f32 1.0, %v2546_v52 }
 0x12e   : > { %v718_v4 = vmul.f32 0.7978846, %v686_v46  ;;  %v810_v62 = vmul.f32 %v778_v12, %v554_v29  ;;  %v556_v25 = vmul.f32 0.5, %v2926_v9  ;;  %v656_v36 = vmul.f32 %v4310_v40, %v4309_v17 }
 0x12f   : > { %892 = vadd.xlane.f32.xlu1 %v891_v41  ;;  %v687_v7 = vadd.f32 %v655_v18, %v4306_v49  ;;  %v897_v20 = vsel %vm328_vm0, %v3241_v24, 0.0  ;;  %v3265_v58 = vadd.f32 %v809_v33, %v4311_v28  ;;  %v657_v55 = vmul.f32 %v4313_v56, %v4312_v6  ;;  %v4315_v41 = vld [vmem:[#allocation3_spill] sm:$0xff] }
 0x130   : > { %895 = vadd.xlane.f32.xlu0 %v894_v48  ;;  %2551 = vtanh.f32 %v718_v4  ;;  %v2548_v60 = vpop.eup %2547  ;;  %v811_v14 = vmul.f32 %v779_v44, %v555_v16  ;;  %v557_v9 = vmul.f32 0.5, %v2932_v27  ;;  %v688_v15 = vadd.f32 %v656_v36, %v4309_v17  ;;  %v4316_v4 = vld [vmem:[#allocation4_spill] sm:$0xff] }
 0x131   : > { %v719_v3 = vmul.f32 0.7978846, %v687_v7  ;;  %v900_v63 = vsel %vm328_vm0, %v3256_v21, 0.0  ;;  %v780_v26 = vadd.f32 1.0, %v2548_v60  ;;  %v689_v29 = vadd.f32 %v657_v55, %v4312_v6 }
 0x132   : > { %v658_v12 = vmul.f32 %v3097_v10, %v3018_v0  ;;  %v3277_v33 = vadd.f32 %v810_v62, %v4314_v47  ;;  %v720_v46 = vmul.f32 0.7978846, %v688_v15  ;;  %v659_v27 = vmul.f32 %v3117_v34, %v3036_v57 }
 0x133   : > { %898 = vadd.xlane.f32.xlu1 %v897_v20  ;;  %2553 = vtanh.f32 %v719_v3  ;;  %v903_v52 = vsel %vm328_vm0, %v3265_v58, 0.0  ;;  %v812_v48 = vmul.f32 %v780_v26, %v556_v25  ;;  %v721_v16 = vmul.f32 0.7978846, %v689_v29 }
 0x134   : > { %901 = vadd.xlane.f32.xlu0 %v900_v63  ;;  %v690_v53 = vadd.f32 %v658_v12, %v3018_v0  ;;  %v3285_v10 = vadd.f32 %v811_v14, %v4315_v41  ;;  %2555 = vtanh.f32 %v720_v46  ;;  %v691_v54 = vadd.f32 %v659_v27, %v3036_v57 }
 0x135   : > { %v2550_v18 = vpop.eup %2549  ;;  %v660_v44 = vmul.f32 %v3094_v5, %v3011_v30  ;;  %v3291_v34 = vadd.f32 %v812_v48, %v4316_v4  ;;  %2557 = vtanh.f32 %v721_v16  ;;  %v906_v25 = vsel %vm328_vm0, %v3277_v33, 0.0 }
 0x136   : > { %v781_v62 = vadd.f32 1.0, %v2550_v18  ;;  %v722_v7 = vmul.f32 0.7978846, %v690_v53  ;;  %v723_v40 = vmul.f32 0.7978846, %v691_v54  ;;  %v661_v20 = vmul.f32 %v3110_v13, %v3031_v23 }
 0x137   : > { %904 = vadd.xlane.f32.xlu1 %v903_v52  ;;  %v692_v36 = vadd.f32 %v660_v44, %v3011_v30  ;;  %v633_v28 = vmul.f32 %v601_v19, %v3103_v51  ;;  %v558_v56 = vmul.f32 0.5, %v4303_v37  ;;  %v662_v14 = vmul.f32 %v3144_v22, %v3080_v31  ;;  %v4317_v19 = vld [vmem:[#allocation5_spill] sm:$0xff] }
 0x138   : > { %907 = vadd.xlane.f32.xlu0 %v906_v25  ;;  %v813_v5 = vmul.f32 %v781_v62, %v557_v9  ;;  %2559 = vtanh.f32 %v722_v7  ;;  %v693_v60 = vadd.f32 %v661_v20, %v3031_v23  ;;  %v909_v15 = vsel %vm328_vm0, %v3285_v10, 0.0 }
 0x139   : > { %2561 = vtanh.f32 %v723_v40  ;;  %v724_v55 = vmul.f32 0.7978846, %v692_v36  ;;  %v912_v13 = vsel %vm328_vm0, %v3291_v34, 0.0  ;;  %v663_v37 = vmul.f32 %v3246_v61, %v3106_v2 }
 0x13a   : > { %v2552_v3 = vpop.eup %2551  ;;  %v3308_v63 = vadd.f32 %v813_v5, %v4317_v19  ;;  %v725_v26 = vmul.f32 0.7978846, %v693_v60  ;;  %v694_v29 = vadd.f32 %v662_v14, %v3080_v31  ;;  %v559_v22 = vmul.f32 0.5, %v4306_v49  ;;  %v4320_v19 = vld [vmem:[#allocation9_spill] sm:$0xff] }
 0x13b   : > { %910 = vadd.xlane.f32.xlu1 %v909_v15  ;;  %v782_v9 = vadd.f32 1.0, %v2552_v3  ;;  %2563 = vtanh.f32 %v724_v55  ;;  %v560_v12 = vmul.f32 0.5, %v4309_v17  ;;  %v695_v47 = vadd.f32 %v663_v37, %v3106_v2  ;;  %v4318_v17 = vld [vmem:[#allocation6_spill] sm:$0xff] }
 0x13c   : > { %913 = vadd.xlane.f32.xlu0 %v912_v13  ;;  %v664_v46 = vmul.f32 %v3139_v35, %v3077_v39  ;;  %2565 = vtanh.f32 %v725_v26  ;;  %v726_v61 = vmul.f32 0.7978846, %v694_v29  ;;  %v665_v48 = vmul.f32 %v633_v28, %v3103_v51  ;;  %v4321_v29 = vld [vmem:[#allocation10_spill] sm:$0xff] }
 0x13d   : > { %v2554_v27 = vpop.eup %2553  ;;  %v814_v52 = vmul.f32 %v782_v9, %v558_v56  ;;  %v915_v16 = vsel %vm328_vm0, %v3308_v63, 0.0  ;;  %v727_v18 = vmul.f32 0.7978846, %v695_v47  ;;  %v561_v35 = vmul.f32 0.5, %v4312_v6  ;;  %v4319_v56 = vld [vmem:[#allocation7_spill] sm:$0xff] }
 0x13e   : > { %v783_v53 = vadd.f32 1.0, %v2554_v27  ;;  %v696_v49 = vadd.f32 %v664_v46, %v3077_v39  ;;  %v2556_v41 = vpop.eup %2555  ;;  %2567 = vtanh.f32 %v726_v61  ;;  %v697_v44 = vadd.f32 %v665_v48, %v3103_v51  ;;  %v4322_v61 = vld [vmem:[#allocation11_spill] sm:$0xff] }
 0x13f   : > { %916 = vadd.xlane.f32.xlu1 %v915_v16  ;;  %v3323_v54 = vadd.f32 %v814_v52, %v4318_v17  ;;  %v2558_v4 = vpop.eup %2557  ;;  %v784_v7 = vadd.f32 1.0, %v2556_v41  ;;  %2569 = vtanh.f32 %v727_v18  ;;  %v562_v20 = vmul.f32 0.5, %v3018_v0 }
 0x140   : > { %v815_v62 = vmul.f32 %v783_v53, %v559_v22  ;;  %v728_v25 = vmul.f32 0.7978846, %v696_v49  ;;  %v785_v36 = vadd.f32 1.0, %v2558_v4  ;;  %v729_v28 = vmul.f32 0.7978846, %v697_v44  ;;  %v4323_v53 = vld [vmem:[#allocation12_spill] sm:$0xff] }
 0x141   : > { %v918_v40 = vsel %vm328_vm0, %v3323_v54, 0.0  ;;  %v816_v6 = vmul.f32 %v784_v7, %v560_v12  ;;  %v563_v60 = vmul.f32 0.5, %v3036_v57  ;;  %v564_v9 = vmul.f32 0.5, %v3011_v30  ;;  %v4324_v4 = vld [vmem:[#allocation17_spill] sm:$0xff] }
 0x142   : > { %v2560_v5 = vpop.eup %2559  ;;  %919 = vadd.xlane.f32.xlu0 %v918_v40  ;;  %v3331_v55 = vadd.f32 %v815_v62, %v4319_v56  ;;  %2571 = vtanh.f32 %v728_v25  ;;  %v817_v3 = vmul.f32 %v785_v36, %v561_v35  ;;  %v565_v27 = vmul.f32 0.5, %v3031_v23 }
 0x143   : > { %v2562_v14 = vpop.eup %2561  ;;  %v786_v15 = vadd.f32 1.0, %v2560_v5  ;;  %2573 = vtanh.f32 %v729_v28  ;;  %v3337_v37 = vadd.f32 %v816_v6, %v4320_v19  ;;  %v566_v30 = vmul.f32 0.5, %v3080_v31  ;;  %v4325_v28 = vld [vmem:[#allocation18_spill] sm:$0xff] }
 0x144   : > { %v921_v13 = vsel %vm328_vm0, %v3331_v55, 0.0  ;;  %v787_v0 = vadd.f32 1.0, %v2562_v14  ;;  %v3341_v22 = vadd.f32 %v817_v3, %v4321_v29  ;;  %v567_v35 = vmul.f32 0.5, %v3106_v2 }
 0x145   : > { %v2564_v26 = vpop.eup %2563  ;;  %922 = vadd.xlane.f32.xlu1 %v921_v13  ;;  %v818_v57 = vmul.f32 %v786_v15, %v562_v20  ;;  %v924_v12 = vsel %vm328_vm0, %v3337_v37, 0.0  ;;  %v568_v40 = vmul.f32 0.5, %v3077_v39  ;;  %v569_v56 = vmul.f32 0.5, %v3103_v51  ;;  %v4326_v15 = vld [vmem:[#allocation19_spill] sm:$0xff] }
 0x146   : > { %v819_v47 = vmul.f32 %v787_v0, %v563_v60  ;;  %v788_v46 = vadd.f32 1.0, %v2564_v26  ;;  %v2566_v52 = vpop.eup %2565  ;;  %925 = vadd.xlane.f32.xlu0 %v924_v12  ;;  %v927_v16 = vsel %vm328_vm0, %v3341_v22, 0.0 }
 0x147   : > { %v3347_v48 = vadd.f32 %v818_v57, %v4322_v61  ;;  %v789_v41 = vadd.f32 1.0, %v2566_v52  ;;  %v4328_v57 = vld [vmem:[#allocation23_spill] sm:$0xff] }
 0x148   : > { %v3353_v18 = vadd.f32 %v819_v47, %v4323_v53  ;;  %v820_v49 = vmul.f32 %v788_v46, %v564_v9  ;;  %v2568_v17 = vpop.eup %2567  ;;  %v4327_v9 = vld [vmem:[#allocation20_spill] sm:$0xff] }
 0x149   : > { %928 = vadd.xlane.f32.xlu1 %v927_v16  ;;  %v2570_v23 = vpop.eup %2569  ;;  %v930_v44 = vsel %vm328_vm0, %v3347_v48, 0.0  ;;  %v821_v31 = vmul.f32 %v789_v41, %v565_v27  ;;  %v790_v7 = vadd.f32 1.0, %v2568_v17  ;;  %v4329_v46 = vld [vmem:[#allocation24_spill] sm:$0xff]  ;;  %v4330_v17 = vld [vmem:[#allocation33_spill] sm:$0xff] }
 0x14a   : > { %v3359_v62 = vadd.f32 %v820_v49, %v4324_v4  ;;  %931 = vadd.xlane.f32.xlu0 %v930_v44  ;;  %v791_v25 = vadd.f32 1.0, %v2570_v23  ;;  %v933_v20 = vsel %vm328_vm0, %v3353_v18, 0.0  ;;  %v4331_v23 = vld [vmem:[#allocation34_spill] sm:$0xff] }
 0x14b   : > { %v3365_v5 = vadd.f32 %v821_v31, %v4325_v28  ;;  %v822_v2 = vmul.f32 %v790_v7, %v566_v30  ;;  %v2501_v30 = vld [vmem:[%s4215_s2] sm:$0xff]  }
 0x14c   : > { %v2572_v36 = vpop.eup %2571  ;;  %v823_v60 = vmul.f32 %v791_v25, %v567_v35  ;;  %v936_v3 = vsel %vm328_vm0, %v3359_v62, 0.0  ;;  %2403 = vmatprep.subr.bf16.mxu1 %v2501_v30 }
 0x14d   : > { %v2574_v6 = vpop.eup %2573  ;;  %934 = vadd.xlane.f32.xlu1 %v933_v20  ;;  %v792_v14 = vadd.f32 1.0, %v2572_v36  ;;  %v3371_v13 = vadd.f32 %v822_v2, %v4326_v15  ;;  %v939_v0 = vsel %vm328_vm0, %v3365_v5, 0.0  ;;  %2404 = vmatpush3.bf16.msra.mxu1 %v2501_v30  ;;  %v4332_v2 = vld [vmem:[#allocation35_spill] sm:$0xff] }
 0x14e   : > { %v793_v39 = vadd.f32 1.0, %v2574_v6  ;;  %937 = vadd.xlane.f32.xlu0 %v936_v3  ;;  %v3376_v26 = vadd.f32 %v823_v60, %v4327_v9 }
 0x14f   : > { %v824_v19 = vmul.f32 %v792_v14, %v568_v40  ;;  %v942_v29 = vsel %vm328_vm0, %v3371_v13, 0.0 }
 0x150   : > { %v825_v51 = vmul.f32 %v793_v39, %v569_v56  ;;  %v945_v47 = vsel %vm328_vm0, %v3376_v26, 0.0 }
 0x151   : > { %940 = vadd.xlane.f32.xlu1 %v939_v0  ;;  %v3381_v12 = vadd.f32 %v824_v19, %v4328_v57 }
 0x152   : > { %943 = vadd.xlane.f32.xlu0 %v942_v29  ;;  %v3386_v27 = vadd.f32 %v825_v51, %v4329_v46 }
 0x153   : > { %v948_v52 = vsel %vm328_vm0, %v3381_v12, 0.0 }
 0x154   : > { %v951_v61 = vsel %vm328_vm0, %v3386_v27, 0.0 }
 0x155   : > { %946 = vadd.xlane.f32.xlu1 %v945_v47 }
 0x156   : > { %949 = vadd.xlane.f32.xlu0 %v948_v52 }
 0x159   : > { %952 = vadd.xlane.f32.xlu1 %v951_v61 }
 0x196   : > { %v866_v16 = vpop.xlane.xlu1 %865 }
 0x197   : > { %v956_v53 = vmul.f32 0.03125, %v866_v16  ;;  %v860_v49 = vpop.xlane.xlu0 %859 }
 0x198   : > { %v954_v41 = vmul.f32 0.03125, %v860_v49 }
 0x199   : > { %v3396_v35 = vsub.f32 %v4330_v17, %v956_v53 }
 0x19a   : > { %v3399_v44 = vsub.f32 %v4331_v23, %v954_v41 }
 0x19b   : > { %v1020_v25 = vmul.f32 %v3396_v35, %v3396_v35 }
 0x19c   : > { %v1018_v4 = vmul.f32 %v3399_v44, %v3399_v44  ;;  %v869_v31 = vpop.xlane.xlu1 %868 }
 0x19d   : > { %v957_v40 = vmul.f32 0.03125, %v869_v31  ;;  %v1056_v28 = vsel %vm328_vm0, %v1020_v25, 0.0 }
 0x19e   : > { %v1050_v7 = vsel %vm328_vm0, %v1018_v4, 0.0 }
 0x19f   : > { %1051 = vadd.xlane.f32.xlu0 %v1050_v7  ;;  %v3408_v56 = vsub.f32 %v4332_v2, %v957_v40 }
 0x1a1   : > { %v863_v36 = vpop.xlane.xlu0 %862  ;;  %v1021_v3 = vmul.f32 %v3408_v56, %v3408_v56 }
 0x1a2   : > { %v955_v20 = vmul.f32 0.03125, %v863_v36 }
 0x1a3   : > { %1057 = vadd.xlane.f32.xlu0 %v1056_v28  ;;  %v1059_v15 = vsel %vm328_vm0, %v1021_v3, 0.0 }
 0x1a4   : > { %v3411_v6 = vsub.f32 %v3147_v11, %v955_v20 }
 0x1a6   : > { %v1019_v60 = vmul.f32 %v3411_v6, %v3411_v6 }
 0x1a8   : > { %v1053_v14 = vsel %vm328_vm0, %v1019_v60, 0.0 }
 0x1a9   : > { %1054 = vadd.xlane.f32.xlu1 %v1053_v14 }
 0x1ac   : > { %v872_v39 = vpop.xlane.xlu0 %871 }
 0x1ad   : > { %1060 = vadd.xlane.f32.xlu1 %v1059_v15  ;;  %v958_v19 = vmul.f32 0.03125, %v872_v39 }
 0x1af   : > { %v3420_v0 = vsub.f32 %v3182_v59, %v958_v19 }
 0x1b0   : > { %v875_v9 = vpop.xlane.xlu1 %874 }
 0x1b1   : > { %v959_v11 = vmul.f32 0.03125, %v875_v9  ;;  %v878_v51 = vpop.xlane.xlu0 %877  ;;  %v1022_v57 = vmul.f32 %v3420_v0, %v3420_v0 }
 0x1b2   : > { %v960_v29 = vmul.f32 0.03125, %v878_v51 }
 0x1b3   : > { %v3425_v47 = vsub.f32 %v3193_v32, %v959_v11  ;;  %v1062_v61 = vsel %vm328_vm0, %v1022_v57, 0.0 }
 0x1b4   : > { %v3428_v46 = vsub.f32 %v3197_v43, %v960_v29  ;;  %v881_v52 = vpop.xlane.xlu1 %880  ;;  %1063 = vadd.xlane.f32.xlu0 %v1062_v61 }
 0x1b5   : > { %v961_v30 = vmul.f32 0.03125, %v881_v52  ;;  %v884_v59 = vpop.xlane.xlu0 %883  ;;  %v1023_v16 = vmul.f32 %v3425_v47, %v3425_v47 }
 0x1b6   : > { %v962_v53 = vmul.f32 0.03125, %v884_v59  ;;  %v1024_v49 = vmul.f32 %v3428_v46, %v3428_v46 }
 0x1b7   : > { %v3436_v41 = vsub.f32 %v3207_v45, %v961_v30  ;;  %v1065_v32 = vsel %vm328_vm0, %v1023_v16, 0.0 }
 0x1b8   : > { %v3440_v43 = vsub.f32 %v3210_v38, %v962_v53  ;;  %v887_v17 = vpop.xlane.xlu1 %886  ;;  %1066 = vadd.xlane.f32.xlu1 %v1065_v32  ;;  %v1068_v23 = vsel %vm328_vm0, %v1024_v49, 0.0 }
 0x1b9   : > { %v963_v4 = vmul.f32 0.03125, %v887_v17  ;;  %1069 = vadd.xlane.f32.xlu0 %v1068_v23  ;;  %v890_v31 = vpop.xlane.xlu0 %889  ;;  %v1025_v7 = vmul.f32 %v3436_v41, %v3436_v41 }
 0x1ba   : > { %v964_v25 = vmul.f32 0.03125, %v890_v31  ;;  %v1026_v45 = vmul.f32 %v3440_v43, %v3440_v43 }
 0x1bb   : > { %v3448_v40 = vsub.f32 %v3217_v50, %v963_v4  ;;  %v1071_v38 = vsel %vm328_vm0, %v1025_v7, 0.0 }
 0x1bc   : > { %v3452_v36 = vsub.f32 %v3222_v42, %v964_v25  ;;  %v893_v20 = vpop.xlane.xlu1 %892  ;;  %1072 = vadd.xlane.f32.xlu1 %v1071_v38  ;;  %v1074_v28 = vsel %vm328_vm0, %v1026_v45, 0.0 }
 0x1bd   : > { %v965_v2 = vmul.f32 0.03125, %v893_v20  ;;  %1075 = vadd.xlane.f32.xlu0 %v1074_v28  ;;  %v896_v60 = vpop.xlane.xlu0 %895  ;;  %v1027_v14 = vmul.f32 %v3448_v40, %v3448_v40 }
 0x1be   : > { %v966_v3 = vmul.f32 0.03125, %v896_v60  ;;  %v1028_v50 = vmul.f32 %v3452_v36, %v3452_v36 }
 0x1bf   : > { %v3460_v15 = vsub.f32 %v3229_v1, %v965_v2  ;;  %v1077_v42 = vsel %vm328_vm0, %v1027_v14, 0.0 }
 0x1c0   : > { %v3464_v39 = vsub.f32 %v3232_v8, %v966_v3  ;;  %v899_v19 = vpop.xlane.xlu1 %898  ;;  %1078 = vadd.xlane.f32.xlu1 %v1077_v42  ;;  %v1080_v9 = vsel %vm328_vm0, %v1028_v50, 0.0 }
 0x1c1   : > { %v967_v11 = vmul.f32 0.03125, %v899_v19  ;;  %1081 = vadd.xlane.f32.xlu0 %v1080_v9  ;;  %v902_v51 = vpop.xlane.xlu0 %901  ;;  %v1029_v29 = vmul.f32 %v3460_v15, %v3460_v15 }
 0x1c2   : > { %v968_v57 = vmul.f32 0.03125, %v902_v51  ;;  %v1030_v1 = vmul.f32 %v3464_v39, %v3464_v39 }
 0x1c3   : > { %v3472_v52 = vsub.f32 %v3241_v24, %v967_v11  ;;  %v1083_v8 = vsel %vm328_vm0, %v1029_v29, 0.0 }
 0x1c4   : > { %v3476_v61 = vsub.f32 %v3256_v21, %v968_v57  ;;  %v905_v30 = vpop.xlane.xlu1 %904  ;;  %1084 = vadd.xlane.f32.xlu1 %v1083_v8  ;;  %v1086_v59 = vsel %vm328_vm0, %v1030_v1, 0.0 }
 0x1c5   : > { %v969_v16 = vmul.f32 0.03125, %v905_v30  ;;  %1087 = vadd.xlane.f32.xlu0 %v1086_v59  ;;  %v908_v53 = vpop.xlane.xlu0 %907  ;;  %v1031_v49 = vmul.f32 %v3472_v52, %v3472_v52 }
 0x1c6   : > { %v970_v32 = vmul.f32 0.03125, %v908_v53  ;;  %v1032_v24 = vmul.f32 %v3476_v61, %v3476_v61 }
 0x1c7   : > { %v3484_v17 = vsub.f32 %v3265_v58, %v969_v16  ;;  %v1089_v21 = vsel %vm328_vm0, %v1031_v49, 0.0 }
 0x1c8   : > { %v3488_v23 = vsub.f32 %v3277_v33, %v970_v32  ;;  %v911_v4 = vpop.xlane.xlu1 %910  ;;  %1090 = vadd.xlane.f32.xlu1 %v1089_v21  ;;  %v1092_v31 = vsel %vm328_vm0, %v1032_v24, 0.0 }
 0x1c9   : > { %v971_v7 = vmul.f32 0.03125, %v911_v4  ;;  %1093 = vadd.xlane.f32.xlu0 %v1092_v31  ;;  %v914_v25 = vpop.xlane.xlu0 %913  ;;  %v1033_v45 = vmul.f32 %v3484_v17, %v3484_v17 }
 0x1ca   : > { %v972_v38 = vmul.f32 0.03125, %v914_v25  ;;  %v1034_v58 = vmul.f32 %v3488_v23, %v3488_v23 }
 0x1cb   : > { %v3496_v20 = vsub.f32 %v3285_v10, %v971_v7  ;;  %v1095_v33 = vsel %vm328_vm0, %v1033_v45, 0.0 }
 0x1cc   : > { %v3500_v28 = vsub.f32 %v3291_v34, %v972_v38  ;;  %v917_v2 = vpop.xlane.xlu1 %916  ;;  %1096 = vadd.xlane.f32.xlu1 %v1095_v33  ;;  %v1098_v60 = vsel %vm328_vm0, %v1034_v58, 0.0 }
 0x1cd   : > { %v973_v14 = vmul.f32 0.03125, %v917_v2  ;;  %1099 = vadd.xlane.f32.xlu0 %v1098_v60  ;;  %v1035_v3 = vmul.f32 %v3496_v20, %v3496_v20 }
 0x1ce   : > { %v1036_v50 = vmul.f32 %v3500_v28, %v3500_v28 }
 0x1cf   : > { %v3508_v10 = vsub.f32 %v3308_v63, %v973_v14  ;;  %v920_v42 = vpop.xlane.xlu0 %919  ;;  %v1101_v19 = vsel %vm328_vm0, %v1035_v3, 0.0 }
 0x1d0   : > { %v974_v34 = vmul.f32 0.03125, %v920_v42  ;;  %1102 = vadd.xlane.f32.xlu1 %v1101_v19  ;;  %v1104_v9 = vsel %vm328_vm0, %v1036_v50, 0.0 }
 0x1d1   : > { %1105 = vadd.xlane.f32.xlu0 %v1104_v9  ;;  %v1037_v11 = vmul.f32 %v3508_v10, %v3508_v10 }
 0x1d2   : > { %v3515_v51 = vsub.f32 %v3323_v54, %v974_v34  ;;  %v923_v29 = vpop.xlane.xlu1 %922  ;;  %v2502_v54 = vld [vmem:[%s4215_s2 + $0x8] sm:$0xff]  }
 0x1d3   : > { %v975_v57 = vmul.f32 0.03125, %v923_v29  ;;  %v1107_v1 = vsel %vm328_vm0, %v1037_v11, 0.0  ;;  %v926_v63 = vpop.xlane.xlu0 %925  ;;  %2405 = vmatprep.subr.bf16.mxu1 %v2502_v54 }
 0x1d4   : > { %1108 = vadd.xlane.f32.xlu1 %v1107_v1  ;;  %v1038_v8 = vmul.f32 %v3515_v51, %v3515_v51  ;;  %v976_v59 = vmul.f32 0.03125, %v926_v63  ;;  %2406 = vmatpush3.bf16.msra.mxu1 %v2502_v54 }
 0x1d5   : > { %v3521_v30 = vsub.f32 %v3331_v55, %v975_v57 }
 0x1d6   : > { %v929_v16 = vpop.xlane.xlu1 %928  ;;  %v1110_v53 = vsel %vm328_vm0, %v1038_v8, 0.0  ;;  %v3528_v49 = vsub.f32 %v3337_v37, %v976_v59 }
 0x1d7   : > { %v977_v32 = vmul.f32 0.03125, %v929_v16  ;;  %1111 = vadd.xlane.f32.xlu0 %v1110_v53  ;;  %v1039_v24 = vmul.f32 %v3521_v30, %v3521_v30  ;;  %v932_v21 = vpop.xlane.xlu0 %931 }
 0x1d8   : > { %v978_v4 = vmul.f32 0.03125, %v932_v21  ;;  %v1040_v7 = vmul.f32 %v3528_v49, %v3528_v49 }
 0x1d9   : > { %v3533_v55 = vsub.f32 %v3341_v22, %v977_v32  ;;  %v1113_v31 = vsel %vm328_vm0, %v1039_v24, 0.0 }
 0x1da   : > { %v935_v25 = vpop.xlane.xlu1 %934  ;;  %1114 = vadd.xlane.f32.xlu1 %v1113_v31  ;;  %v3539_v37 = vsub.f32 %v3347_v48, %v978_v4  ;;  %v1116_v38 = vsel %vm328_vm0, %v1040_v7, 0.0 }
 0x1db   : > { %v979_v45 = vmul.f32 0.03125, %v935_v25  ;;  %v1041_v58 = vmul.f32 %v3533_v55, %v3533_v55  ;;  %1117 = vadd.xlane.f32.xlu0 %v1116_v38  ;;  %v938_v22 = vpop.xlane.xlu0 %937 }
 0x1dc   : > { %v980_v2 = vmul.f32 0.03125, %v938_v22  ;;  %v1042_v14 = vmul.f32 %v3539_v37, %v3539_v37 }
 0x1dd   : > { %v3545_v33 = vsub.f32 %v3353_v18, %v979_v45  ;;  %v1119_v60 = vsel %vm328_vm0, %v1041_v58, 0.0 }
 0x1de   : > { %v941_v3 = vpop.xlane.xlu1 %940  ;;  %1120 = vadd.xlane.f32.xlu1 %v1119_v60  ;;  %v3551_v48 = vsub.f32 %v3359_v62, %v980_v2  ;;  %v1122_v42 = vsel %vm328_vm0, %v1042_v14, 0.0 }
 0x1df   : > { %v981_v50 = vmul.f32 0.03125, %v941_v3  ;;  %v1043_v19 = vmul.f32 %v3545_v33, %v3545_v33  ;;  %1123 = vadd.xlane.f32.xlu0 %v1122_v42  ;;  %v944_v18 = vpop.xlane.xlu0 %943 }
 0x1e0   : > { %v982_v9 = vmul.f32 0.03125, %v944_v18  ;;  %v1044_v29 = vmul.f32 %v3551_v48, %v3551_v48 }
 0x1e1   : > { %v3557_v34 = vsub.f32 %v3365_v5, %v981_v50  ;;  %v1125_v11 = vsel %vm328_vm0, %v1043_v19, 0.0 }
 0x1e2   : > { %v947_v57 = vpop.xlane.xlu1 %946  ;;  %1126 = vadd.xlane.f32.xlu1 %v1125_v11  ;;  %v3563_v62 = vsub.f32 %v3371_v13, %v982_v9  ;;  %v1128_v63 = vsel %vm328_vm0, %v1044_v29, 0.0 }
 0x1e3   : > { %v983_v1 = vmul.f32 0.03125, %v947_v57  ;;  %v1045_v8 = vmul.f32 %v3557_v34, %v3557_v34  ;;  %1129 = vadd.xlane.f32.xlu0 %v1128_v63  ;;  %v950_v5 = vpop.xlane.xlu0 %949  ;;  %v3594_v57 = vld [vmem:[%s4217_s4 + $0x1] ss:$0 sm:$0xff] }
 0x1e4   : > { %v984_v16 = vmul.f32 0.03125, %v950_v5  ;;  %v1046_v54 = vmul.f32 %v3563_v62, %v3563_v62 }
 0x1e5   : > { %v3569_v59 = vsub.f32 %v3376_v26, %v983_v1  ;;  %v1131_v53 = vsel %vm328_vm0, %v1045_v8, 0.0 }
 0x1e6   : > { %v953_v32 = vpop.xlane.xlu1 %952  ;;  %1132 = vadd.xlane.f32.xlu1 %v1131_v53  ;;  %v3575_v13 = vsub.f32 %v3381_v12, %v984_v16  ;;  %v1134_v21 = vsel %vm328_vm0, %v1046_v54, 0.0 }
 0x1e7   : > { %v985_v24 = vmul.f32 0.03125, %v953_v32  ;;  %v1047_v4 = vmul.f32 %v3569_v59, %v3569_v59  ;;  %1135 = vadd.xlane.f32.xlu0 %v1134_v21 }
 0x1e8   : > { %v1048_v7 = vmul.f32 %v3575_v13, %v3575_v13 }
 0x1e9   : > { %v3581_v26 = vsub.f32 %v3386_v27, %v985_v24  ;;  %v1137_v31 = vsel %vm328_vm0, %v1047_v4, 0.0 }
 0x1ea   : > { %1138 = vadd.xlane.f32.xlu1 %v1137_v31  ;;  %v1140_v25 = vsel %vm328_vm0, %v1048_v7, 0.0 }
 0x1eb   : > { %v1049_v12 = vmul.f32 %v3581_v26, %v3581_v26  ;;  %1141 = vadd.xlane.f32.xlu0 %v1140_v25 }
 0x1ed   : > { %v1143_v45 = vsel %vm328_vm0, %v1049_v12, 0.0 }
 0x1ee   : > { %1144 = vadd.xlane.f32.xlu1 %v1143_v45 }
 0x22c   : > { %v1052_v38 = vpop.xlane.xlu0 %1051 }
 0x22d   : > { %v1146_v58 = vmul.f32 0.03125, %v1052_v38 }
 0x22f   : > { %v1178_v22 = vadd.f32 1e-05, %v1146_v58 }
 0x230   : > { %v1058_v27 = vpop.xlane.xlu0 %1057 }
 0x231   : > { %v1148_v2 = vmul.f32 0.03125, %v1058_v27  ;;  %2575 = vrsqrt.f32 %v1178_v22 }
 0x233   : > { %v1180_v60 = vadd.f32 1e-05, %v1148_v2 }
 0x235   : > { %2577 = vrsqrt.f32 %v1180_v60 }
 0x236   : > { %v1055_v14 = vpop.xlane.xlu1 %1054 }
 0x237   : > { %v1147_v3 = vmul.f32 0.03125, %v1055_v14 }
 0x239   : > { %v1179_v50 = vadd.f32 1e-05, %v1147_v3 }
 0x23a   : > { %v1061_v42 = vpop.xlane.xlu1 %1060 }
 0x23b   : > { %2579 = vrsqrt.f32 %v1179_v50  ;;  %v1149_v19 = vmul.f32 0.03125, %v1061_v42  ;;  %v2576_v9 = vpop.eup %2575 }
 0x23c   : > { %v1242_v11 = vmul.f32 %v2576_v9, %v3399_v44  ;;  %v3602_v44 = vld [vmem:[%s4217_s4 + $0x2] ss:$0 sm:$0xff] }
 0x23d   : > { %v1181_v18 = vadd.f32 1e-05, %v1149_v19 }
 0x23e   : > { %v1278_v54 = vmul.f32 %v3594_v57, %v1242_v11 }
 0x23f   : > { %2581 = vrsqrt.f32 %v1181_v18  ;;  %v2578_v29 = vpop.eup %2577 }
 0x240   : > { %v1244_v5 = vmul.f32 %v2578_v29, %v3396_v35  ;;  %v3607_v38 = vadd.f32 %v3602_v44, %v1278_v54 }
 0x241   : > { %v1064_v1 = vpop.xlane.xlu0 %1063 }
 0x242   : > { %v1150_v63 = vmul.f32 0.03125, %v1064_v1  ;;  %v1280_v35 = vmul.f32 %v3594_v57, %v1244_v5 }
 0x244   : > { %v1182_v16 = vadd.f32 1e-05, %v1150_v63  ;;  %v3617_v19 = vadd.f32 %v3602_v44, %v1280_v35 }
 0x245   : > { %v2580_v8 = vpop.eup %2579  ;;  %v1067_v53 = vpop.xlane.xlu1 %1066 }
 0x246   : > { %v1243_v32 = vmul.f32 %v2580_v8, %v3411_v6  ;;  %v1151_v24 = vmul.f32 0.03125, %v1067_v53  ;;  %v1070_v21 = vpop.xlane.xlu0 %1069  ;;  %2583 = vrsqrt.f32 %v1182_v16 }
 0x247   : > { %v1152_v4 = vmul.f32 0.03125, %v1070_v21 }
 0x248   : > { %v1183_v31 = vadd.f32 1e-05, %v1151_v24  ;;  %v1279_v7 = vmul.f32 %v3594_v57, %v1243_v32 }
 0x249   : > { %v2582_v25 = vpop.eup %2581  ;;  %v1184_v12 = vadd.f32 1e-05, %v1152_v4  ;;  %v1073_v45 = vpop.xlane.xlu1 %1072 }
 0x24a   : > { %v1245_v6 = vmul.f32 %v2582_v25, %v3408_v56  ;;  %2585 = vrsqrt.f32 %v1183_v31  ;;  %v1153_v58 = vmul.f32 0.03125, %v1073_v45  ;;  %v1076_v22 = vpop.xlane.xlu0 %1075  ;;  %v3611_v27 = vadd.f32 %v3602_v44, %v1279_v7 }
 0x24b   : > { %2587 = vrsqrt.f32 %v1184_v12  ;;  %v1154_v2 = vmul.f32 0.03125, %v1076_v22 }
 0x24c   : > { %v1281_v60 = vmul.f32 %v3594_v57, %v1245_v6  ;;  %v1185_v14 = vadd.f32 1e-05, %v1153_v58  ;;  %v1346_v3 = vpack.c.bf16 %v3611_v27, %v3607_v38 }
 0x24d   : > { %v1186_v50 = vadd.f32 1e-05, %v1154_v2  ;;  %v1079_v42 = vpop.xlane.xlu1 %1078 }
 0x24e   : > { %v3620_v56 = vadd.f32 %v3602_v44, %v1281_v60  ;;  %2589 = vrsqrt.f32 %v1185_v14  ;;  %v1155_v18 = vmul.f32 0.03125, %v1079_v42  ;;  %v1082_v9 = vpop.xlane.xlu0 %1081  ;;  %2407 = vmatprep.mubr.msk.bf16.mxu1 %vm328_vm0, %v1346_v3 }
 0x24f   : > { %2591 = vrsqrt.f32 %v1186_v50  ;;  %v1156_v11 = vmul.f32 0.03125, %v1082_v9 }
 0x250   : > { %v1187_v29 = vadd.f32 1e-05, %v1155_v18  ;;  %v1347_v1 = vpack.c.bf16 %v3620_v56, %v3617_v19  ;;  %v2584_v63 = vpop.eup %2583 }
 0x251   : > { %v1188_v8 = vadd.f32 1e-05, %v1156_v11  ;;  %v1085_v5 = vpop.xlane.xlu1 %1084  ;;  %v1246_v16 = vmul.f32 %v2584_v63, %v3420_v0 }
 0x252   : > { %2593 = vrsqrt.f32 %v1187_v29  ;;  %v1157_v53 = vmul.f32 0.03125, %v1085_v5  ;;  %v1088_v54 = vpop.xlane.xlu0 %1087  ;;  %2408 = vmatmul.mubr.msk.bf16.vlgmr.msra.gmra.mrb[16].mxu1 %vm328_vm0, %v1347_v1 }
 0x253   : > { %2595 = vrsqrt.f32 %v1188_v8  ;;  %v1158_v32 = vmul.f32 0.03125, %v1088_v54  ;;  %v1282_v4 = vmul.f32 %v3594_v57, %v1246_v16 }
 0x254   : > { %v2586_v24 = vpop.eup %2585  ;;  %v1189_v21 = vadd.f32 1e-05, %v1157_v53 }
 0x255   : > { %v2588_v31 = vpop.eup %2587  ;;  %v1247_v7 = vmul.f32 %v2586_v24, %v3425_v47  ;;  %v1190_v25 = vadd.f32 1e-05, %v1158_v32  ;;  %v1091_v35 = vpop.xlane.xlu1 %1090  ;;  %v3632_v60 = vadd.f32 %v3602_v44, %v1282_v4 }
 0x256   : > { %v1248_v12 = vmul.f32 %v2588_v31, %v3428_v46  ;;  %2597 = vrsqrt.f32 %v1189_v21  ;;  %v1159_v0 = vmul.f32 0.03125, %v1091_v35  ;;  %v1094_v45 = vpop.xlane.xlu0 %1093 }
 0x257   : > { %2599 = vrsqrt.f32 %v1190_v25  ;;  %v1160_v6 = vmul.f32 0.03125, %v1094_v45  ;;  %v1283_v58 = vmul.f32 %v3594_v57, %v1247_v7 }
 0x258   : > { %v2590_v22 = vpop.eup %2589  ;;  %v1191_v2 = vadd.f32 1e-05, %v1159_v0  ;;  %v1284_v46 = vmul.f32 %v3594_v57, %v1248_v12 }
 0x259   : > { %v2592_v14 = vpop.eup %2591  ;;  %v1249_v3 = vmul.f32 %v2590_v22, %v3436_v41  ;;  %v1192_v47 = vadd.f32 1e-05, %v1160_v6  ;;  %v1097_v50 = vpop.xlane.xlu1 %1096  ;;  %v3636_v42 = vadd.f32 %v3602_v44, %v1283_v58 }
 0x25a   : > { %v1250_v18 = vmul.f32 %v2592_v14, %v3440_v43  ;;  %2601 = vrsqrt.f32 %v1191_v2  ;;  %v1161_v9 = vmul.f32 0.03125, %v1097_v50  ;;  %v1100_v11 = vpop.xlane.xlu0 %1099  ;;  %v3647_v43 = vadd.f32 %v3602_v44, %v1284_v46 }
 0x25b   : > { %2603 = vrsqrt.f32 %v1192_v47  ;;  %v1162_v29 = vmul.f32 0.03125, %v1100_v11  ;;  %v1348_v1 = vpack.c.bf16 %v3636_v42, %v3632_v60  ;;  %v1285_v63 = vmul.f32 %v3594_v57, %v1249_v3 }
 0x25c   : > { %v2594_v41 = vpop.eup %2593  ;;  %v1193_v8 = vadd.f32 1e-05, %v1161_v9  ;;  %v1286_v5 = vmul.f32 %v3594_v57, %v1250_v18 }
 0x25d   : > { %v2596_v16 = vpop.eup %2595  ;;  %v1251_v53 = vmul.f32 %v2594_v41, %v3448_v40  ;;  %v1194_v54 = vadd.f32 1e-05, %v1162_v29  ;;  %v1103_v32 = vpop.xlane.xlu1 %1102  ;;  %2411 = vmatprep.mubr.msk.bf16.mxu1 %vm328_vm0, %v1348_v1  ;;  %v3650_v24 = vadd.f32 %v3602_v44, %v1285_v63 }
 0x25e   : > { %v1252_v21 = vmul.f32 %v2596_v16, %v3452_v36  ;;  %2605 = vrsqrt.f32 %v1193_v8  ;;  %v1163_v4 = vmul.f32 0.03125, %v1103_v32  ;;  %v1106_v31 = vpop.xlane.xlu0 %1105  ;;  %v3657_v0 = vadd.f32 %v3602_v44, %v1286_v5 }
 0x25f   : > { %2607 = vrsqrt.f32 %v1194_v54  ;;  %v1164_v7 = vmul.f32 0.03125, %v1106_v31  ;;  %v1349_v40 = vpack.c.bf16 %v3650_v24, %v3647_v43  ;;  %v1287_v25 = vmul.f32 %v3594_v57, %v1251_v53 }
 0x260   : > { %v2598_v35 = vpop.eup %2597  ;;  %v1195_v12 = vadd.f32 1e-05, %v1163_v4  ;;  %v1288_v2 = vmul.f32 %v3594_v57, %v1252_v21 }
 0x261   : > { %v2600_v45 = vpop.eup %2599  ;;  %v1253_v6 = vmul.f32 %v2598_v35, %v3460_v15  ;;  %v1196_v58 = vadd.f32 1e-05, %v1164_v7  ;;  %v1109_v36 = vpop.xlane.xlu1 %1108  ;;  %2412 = vmatmul.mubr.msk.bf16.gmra.mrb[20].mxu1 %vm328_vm0, %v1349_v40  ;;  %v3662_v22 = vadd.f32 %v3602_v44, %v1287_v25 }
 0x262   : > { %v1254_v14 = vmul.f32 %v2600_v45, %v3464_v39  ;;  %2609 = vrsqrt.f32 %v1195_v12  ;;  %v1165_v3 = vmul.f32 0.03125, %v1109_v36  ;;  %v3673_v39 = vadd.f32 %v3602_v44, %v1288_v2 }
 0x263   : > { %2611 = vrsqrt.f32 %v1196_v58  ;;  %v1350_v47 = vpack.c.bf16 %v3662_v22, %v3657_v0  ;;  %v1289_v50 = vmul.f32 %v3594_v57, %v1253_v6 }
 0x264   : > { %v2602_v15 = vpop.eup %2601  ;;  %v1197_v46 = vadd.f32 1e-05, %v1165_v3  ;;  %v1112_v18 = vpop.xlane.xlu0 %1111  ;;  %v1290_v9 = vmul.f32 %v3594_v57, %v1254_v14 }
 0x265   : > { %v2604_v11 = vpop.eup %2603  ;;  %v1255_v29 = vmul.f32 %v2602_v15, %v3472_v52  ;;  %v1166_v1 = vmul.f32 0.03125, %v1112_v18  ;;  %2415 = vmatprep.mubr.msk.bf16.mxu1 %vm328_vm0, %v1350_v47  ;;  %v3676_v63 = vadd.f32 %v3602_v44, %v1289_v50 }
 0x266   : > { %v1256_v41 = vmul.f32 %v2604_v11, %v3476_v61  ;;  %2613 = vrsqrt.f32 %v1197_v46  ;;  %v3683_v32 = vadd.f32 %v3602_v44, %v1290_v9 }
 0x267   : > { %v1198_v8 = vadd.f32 1e-05, %v1166_v1  ;;  %v1115_v5 = vpop.xlane.xlu1 %1114  ;;  %v1351_v16 = vpack.c.bf16 %v3676_v63, %v3673_v39  ;;  %v1291_v53 = vmul.f32 %v3594_v57, %v1255_v29 }
 0x268   : > { %v2606_v52 = vpop.eup %2605  ;;  %v1167_v54 = vmul.f32 0.03125, %v1115_v5  ;;  %v1118_v31 = vpop.xlane.xlu0 %1117  ;;  %v1292_v7 = vmul.f32 %v3594_v57, %v1256_v41 }
 0x269   : > { %v2608_v21 = vpop.eup %2607  ;;  %v1257_v4 = vmul.f32 %v2606_v52, %v3484_v17  ;;  %2615 = vrsqrt.f32 %v1198_v8  ;;  %2416 = vmatmul.mubr.msk.bf16.gmra.mrb[24].mxu1 %vm328_vm0, %v1351_v16  ;;  %v3688_v61 = vadd.f32 %v3602_v44, %v1291_v53  ;;  %v1168_v35 = vmul.f32 0.03125, %v1118_v31 }
 0x26a   : > { %v1258_v40 = vmul.f32 %v2608_v21, %v3488_v23  ;;  %v1199_v25 = vadd.f32 1e-05, %v1167_v54  ;;  %v3698_v23 = vadd.f32 %v3602_v44, %v1292_v7 }
 0x26b   : > { %v1121_v12 = vpop.xlane.xlu1 %1120  ;;  %v1352_v45 = vpack.c.bf16 %v3688_v61, %v3683_v32  ;;  %v1293_v6 = vmul.f32 %v3594_v57, %v1257_v4  ;;  %v1200_v58 = vadd.f32 1e-05, %v1168_v35 }
 0x26c   : > { %v2610_v17 = vpop.eup %2609  ;;  %2617 = vrsqrt.f32 %v1199_v25  ;;  %v1169_v36 = vmul.f32 0.03125, %v1121_v12  ;;  %v1124_v3 = vpop.xlane.xlu0 %1123  ;;  %v1294_v50 = vmul.f32 %v3594_v57, %v1258_v40 }
 0x26d   : > { %v2612_v2 = vpop.eup %2611  ;;  %v1259_v14 = vmul.f32 %v2610_v17, %v3496_v20  ;;  %2419 = vmatprep.mubr.msk.bf16.mxu1 %vm328_vm0, %v1352_v45  ;;  %v3701_v47 = vadd.f32 %v3602_v44, %v1293_v6  ;;  %2619 = vrsqrt.f32 %v1200_v58  ;;  %v1170_v18 = vmul.f32 0.03125, %v1124_v3 }
 0x26e   : > { %v1260_v15 = vmul.f32 %v2612_v2, %v3500_v28  ;;  %v1201_v46 = vadd.f32 1e-05, %v1169_v36  ;;  %v3711_v28 = vadd.f32 %v3602_v44, %v1294_v50 }
 0x26f   : > { %v1127_v9 = vpop.xlane.xlu1 %1126  ;;  %v1353_v20 = vpack.c.bf16 %v3701_v47, %v3698_v23  ;;  %v1295_v11 = vmul.f32 %v3594_v57, %v1259_v14  ;;  %v1202_v1 = vadd.f32 1e-05, %v1170_v18 }
 0x270   : > { %v2614_v29 = vpop.eup %2613  ;;  %2621 = vrsqrt.f32 %v1201_v46  ;;  %v1171_v41 = vmul.f32 0.03125, %v1127_v9  ;;  %v1130_v5 = vpop.xlane.xlu0 %1129  ;;  %v1296_v53 = vmul.f32 %v3594_v57, %v1260_v15 }
 0x271   : > { %v1261_v8 = vmul.f32 %v2614_v29, %v3508_v10  ;;  %2420 = vmatmul.mubr.msk.bf16.gmra.mrb[28].mxu1 %vm328_vm0, %v1353_v20  ;;  %v3714_v16 = vadd.f32 %v3602_v44, %v1295_v11  ;;  %2623 = vrsqrt.f32 %v1202_v1  ;;  %v1172_v54 = vmul.f32 0.03125, %v1130_v5 }
 0x272   : > { %v1203_v52 = vadd.f32 1e-05, %v1171_v41  ;;  %v3723_v12 = vadd.f32 %v3602_v44, %v1296_v53 }
 0x273   : > { %v2616_v21 = vpop.eup %2615  ;;  %v1133_v4 = vpop.xlane.xlu1 %1132  ;;  %v1354_v31 = vpack.c.bf16 %v3714_v16, %v3711_v28  ;;  %v1297_v10 = vmul.f32 %v3594_v57, %v1261_v8  ;;  %v1204_v40 = vadd.f32 1e-05, %v1172_v54 }
 0x274   : > { %v1262_v7 = vmul.f32 %v2616_v21, %v3515_v51  ;;  %2625 = vrsqrt.f32 %v1203_v52  ;;  %v1173_v25 = vmul.f32 0.03125, %v1133_v4  ;;  %v1136_v35 = vpop.xlane.xlu0 %1135 }
 0x275   : > { %2423 = vmatprep.mubr.msk.bf16.mxu1 %vm328_vm0, %v1354_v31  ;;  %v3726_v45 = vadd.f32 %v3602_v44, %v1297_v10  ;;  %2627 = vrsqrt.f32 %v1204_v40  ;;  %v1174_v58 = vmul.f32 0.03125, %v1136_v35 }
 0x276   : > { %v2618_v6 = vpop.eup %2617  ;;  %v1205_v17 = vadd.f32 1e-05, %v1173_v25  ;;  %v1298_v14 = vmul.f32 %v3594_v57, %v1262_v7 }
 0x277   : > { %v1263_v36 = vmul.f32 %v2618_v6, %v3521_v30  ;;  %v1139_v2 = vpop.xlane.xlu1 %1138  ;;  %v1355_v51 = vpack.c.bf16 %v3726_v45, %v3723_v12  ;;  %v2620_v3 = vpop.eup %2619  ;;  %v1206_v50 = vadd.f32 1e-05, %v1174_v58 }
 0x278   : > { %2629 = vrsqrt.f32 %v1205_v17  ;;  %v1175_v15 = vmul.f32 0.03125, %v1139_v2  ;;  %v1264_v46 = vmul.f32 %v2620_v3, %v3528_v49  ;;  %v1142_v18 = vpop.xlane.xlu0 %1141  ;;  %v3737_v41 = vadd.f32 %v3602_v44, %v1298_v14 }
 0x279   : > { %2424 = vmatmul.mubr.msk.bf16.gmra.mrb[32].mxu1 %vm328_vm0, %v1355_v51  ;;  %v1299_v9 = vmul.f32 %v3594_v57, %v1263_v36  ;;  %2631 = vrsqrt.f32 %v1206_v50  ;;  %v1176_v11 = vmul.f32 0.03125, %v1142_v18 }
 0x27a   : > { %v2622_v20 = vpop.eup %2621  ;;  %v1207_v30 = vadd.f32 1e-05, %v1175_v15  ;;  %4333 = vst [vmem:[#allocation8_spill] sm:$0xff] %v3737_v41  ;;  %v1300_v49 = vmul.f32 %v3594_v57, %v1264_v46 }
 0x27b   : > { %v1265_v29 = vmul.f32 %v2622_v20, %v3533_v55  ;;  %v1145_v1 = vpop.xlane.xlu1 %1144  ;;  %v3740_v8 = vadd.f32 %v3602_v44, %v1299_v9  ;;  %v2624_v5 = vpop.eup %2623  ;;  %v1208_v53 = vadd.f32 1e-05, %v1176_v11 }
 0x27c   : > { %2633 = vrsqrt.f32 %v1207_v30  ;;  %v1177_v52 = vmul.f32 0.03125, %v1145_v1  ;;  %v1266_v54 = vmul.f32 %v2624_v5, %v3539_v37  ;;  %v3750_v7 = vadd.f32 %v3602_v44, %v1300_v49 }
 0x27d   : > { %4334 = vst [vmem:[#allocation13_spill] sm:$0xff] %v3740_v8  ;;  %v1356_v21 = vpack.c.bf16 %v3740_v8, %v3737_v41  ;;  %v1301_v55 = vmul.f32 %v3594_v57, %v1265_v29  ;;  %2635 = vrsqrt.f32 %v1208_v53 }
 0x27e   : > { %v2626_v4 = vpop.eup %2625  ;;  %v1209_v31 = vadd.f32 1e-05, %v1177_v52  ;;  %v1302_v37 = vmul.f32 %v3594_v57, %v1266_v54 }
 0x27f   : > { %v1267_v10 = vmul.f32 %v2626_v4, %v3545_v33  ;;  %2427 = vmatprep.mubr.msk.bf16.mxu1 %vm328_vm0, %v1356_v21  ;;  %v3753_v40 = vadd.f32 %v3602_v44, %v1301_v55  ;;  %v2628_v25 = vpop.eup %2627  ;;  %v2503_v21 = vld [vmem:[%s4216_s3] sm:$0xff]   ;;  %v2506_v55 = vld [vmem:[%s4216_s3 + $0x18] sm:$0xff]  }
 0x280   : > { %2637 = vrsqrt.f32 %v1209_v31  ;;  %v1268_v35 = vmul.f32 %v2628_v25, %v3551_v48  ;;  %v3763_v36 = vadd.f32 %v3602_v44, %v1302_v37  ;;  %2439 = vmatprep.subr.bf16.mxu0 %v2503_v21  ;;  %v2507_v4 = vld [vmem:[%s4216_s3 + $0x20] sm:$0xff]   ;;  %v2508_v31 = vld [vmem:[%s4216_s3 + $0x28] sm:$0xff]   ;;  %v2510_v37 = vld [vmem:[%s4216_s3 + $0x38] sm:$0xff]  }
 0x281   : > { %4335 = vst [vmem:[#allocation14_spill] sm:$0xff] %v3753_v40  ;;  %v1357_v6 = vpack.c.bf16 %v3753_v40, %v3750_v7  ;;  %v1303_v17 = vmul.f32 %v3594_v57, %v1267_v10  ;;  %2440 = vmatpush3.bf16.msra.mxu0 %v2503_v21  ;;  %v2509_v10 = vld [vmem:[%s4216_s3 + $0x30] sm:$0xff]   ;;  %v3835_v25 = vld [vmem:[%s4218_s5] ss:$0 sm:$0xff] }
 0x282   : > { %v2630_v33 = vpop.eup %2629  ;;  %4336 = vst [vmem:[#allocation15_spill] sm:$0xff] %v3763_v36  ;;  %v1304_v51 = vmul.f32 %v3594_v57, %v1268_v35 }
 0x283   : > { %v1269_v58 = vmul.f32 %v2630_v33, %v3557_v34  ;;  %2428 = vmatmul.mubr.msk.bf16.gmra.mrb[36].mxu1 %vm328_vm0, %v1357_v6  ;;  %v3766_v2 = vadd.f32 %v3602_v44, %v1303_v17  ;;  %v2632_v14 = vpop.eup %2631 }
 0x284   : > { %v1270_v48 = vmul.f32 %v2632_v14, %v3563_v62  ;;  %v3776_v46 = vadd.f32 %v3602_v44, %v1304_v51 }
 0x285   : > { %4337 = vst [vmem:[#allocation26_spill] sm:$0xff] %v3766_v2  ;;  %v1358_v3 = vpack.c.bf16 %v3766_v2, %v3763_v36  ;;  %v1305_v50 = vmul.f32 %v3594_v57, %v1269_v58 }
 0x286   : > { %v2634_v15 = vpop.eup %2633  ;;  %4338 = vst [vmem:[#allocation30_spill] sm:$0xff] %v3776_v46  ;;  %v1306_v9 = vmul.f32 %v3594_v57, %v1270_v48 }
 0x287   : > { %v1271_v34 = vmul.f32 %v2634_v15, %v3569_v59  ;;  %2431 = vmatprep.mubr.msk.bf16.mxu1 %vm328_vm0, %v1358_v3  ;;  %v3779_v18 = vadd.f32 %v3602_v44, %v1305_v50  ;;  %v2636_v20 = vpop.eup %2635 }
 0x288   : > { %v1272_v62 = vmul.f32 %v2636_v20, %v3575_v13  ;;  %v3789_v1 = vadd.f32 %v3602_v44, %v1306_v9 }
 0x289   : > { %4339 = vst [vmem:[#allocation16_spill] sm:$0xff] %v3779_v18  ;;  %v1359_v30 = vpack.c.bf16 %v3779_v18, %v3776_v46  ;;  %v1307_v11 = vmul.f32 %v3594_v57, %v1271_v34 }
 0x28a   : > { %v2638_v29 = vpop.eup %2637  ;;  %4340 = vst [vmem:[#allocation28_spill] sm:$0xff] %v3789_v1  ;;  %v1308_v5 = vmul.f32 %v3594_v57, %v1272_v62 }
 0x28b   : > { %v1273_v59 = vmul.f32 %v2638_v29, %v3581_v26  ;;  %2432 = vmatmul.mubr.msk.bf16.gmra.mrb[40].mxu1 %vm328_vm0, %v1359_v30  ;;  %v3792_v49 = vadd.f32 %v3602_v44, %v1307_v11 }
 0x28c   : > { %v3800_v52 = vadd.f32 %v3602_v44, %v1308_v5 }
 0x28d   : > { %4341 = vst [vmem:[#allocation32_spill] sm:$0xff] %v3792_v49  ;;  %v1360_v13 = vpack.c.bf16 %v3792_v49, %v3789_v1  ;;  %v1309_v53 = vmul.f32 %v3594_v57, %v1273_v59  ;;  %v2504_v57 = vld [vmem:[%s4216_s3 + $0x8] sm:$0xff]  }
 0x28e   : > { %4342 = vst [vmem:[#allocation21_spill] sm:$0xff] %v3800_v52  ;;  %2441 = vmatprep.subr.bf16.mxu0 %v2504_v57 }
 0x28f   : > { %2435 = vmatprep.mubr.msk.bf16.mxu1 %vm328_vm0, %v1360_v13  ;;  %v3803_v26 = vadd.f32 %v3602_v44, %v1309_v53  ;;  %2442 = vmatpush3.bf16.msra.mxu0 %v2504_v57  ;;  %v2505_v44 = vld [vmem:[%s4216_s3 + $0x10] sm:$0xff]  }
 0x290   : > { %2443 = vmatprep.subr.bf16.mxu0 %v2505_v44 }
 0x291   : > { %4343 = vst [vmem:[#allocation25_spill] sm:$0xff] %v3803_v26  ;;  %v1361_v54 = vpack.c.bf16 %v3803_v26, %v3800_v52 }
 0x293   : > { %2436 = vmatmul.mubr.msk.bf16.gmra.mrb[44].mxu1 %vm328_vm0, %v1361_v54  ;;  %2444 = vmatpush3.bf16.msra.mxu0 %v2505_v44 }
 0x294   : > { %2445 = vmatprep.subr.bf16.mxu0 %v2506_v55 }
 0x297   : > { %2446 = vmatpush3.bf16.msra.mxu0 %v2506_v55 }
 0x298   : > { %2447 = vmatprep.subr.bf16.mxu0 %v2507_v4 }
 0x29b   : > { %2448 = vmatpush3.bf16.msra.mxu0 %v2507_v4 }
 0x29c   : > { %2449 = vmatprep.subr.bf16.mxu0 %v2508_v31 }
 0x29f   : > { %2450 = vmatpush3.bf16.msra.mxu0 %v2508_v31 }
 0x2a0   : > { %2451 = vmatprep.subr.bf16.mxu0 %v2509_v10 }
 0x2a3   : > { %2452 = vmatpush3.bf16.msra.mxu0 %v2509_v10 }
 0x2a4   : > { %2453 = vmatprep.subr.bf16.mxu0 %v2510_v37 }
 0x2a7   : > { %2454 = vmatpush3.bf16.msra.mxu0 %v2510_v37 }
 0x325   : > { %v2409_v35 = vpop.f32.mrb[16].mxu1 }
 0x326   : > { %v1476_v6 = vadd.f32 %v2409_v35, %v3835_v25  ;;  %v1467_v17 = vpop.f32.mrb[17].mxu1 }
 0x327   : > { %v1468_v33 = vadd.f32 %v3835_v25, %v1467_v17  ;;  %v2410_v58 = vpop.f32.mrb[18].mxu1 }
 0x328   : > { %v1628_v51 = vmul.f32 0.044715, %v1476_v6  ;;  %v1479_v14 = vadd.f32 %v2410_v58, %v3835_v25  ;;  %v1470_v48 = vpop.f32.mrb[19].mxu1 }
 0x329   : > { %v1626_v3 = vmul.f32 0.044715, %v1468_v33  ;;  %v1471_v50 = vadd.f32 %v3835_v25, %v1470_v48 }
 0x32a   : > { %v1660_v15 = vmul.f32 %v1628_v51, %v1476_v6  ;;  %v1629_v34 = vmul.f32 0.044715, %v1479_v14 }
 0x32b   : > { %v1658_v9 = vmul.f32 %v1626_v3, %v1468_v33  ;;  %v1627_v20 = vmul.f32 0.044715, %v1471_v50 }
 0x32c   : > { %v1692_v62 = vmul.f32 %v1660_v15, %v1476_v6  ;;  %v1661_v30 = vmul.f32 %v1629_v34, %v1479_v14 }
 0x32d   : > { %v1690_v11 = vmul.f32 %v1658_v9, %v1468_v33  ;;  %v1659_v29 = vmul.f32 %v1627_v20, %v1471_v50 }
 0x32e   : > { %v1724_v59 = vadd.f32 %v1692_v62, %v1476_v6  ;;  %v1693_v5 = vmul.f32 %v1661_v30, %v1479_v14  ;;  %v1596_v30 = vmul.f32 0.5, %v1476_v6  ;;  %v1595_v6 = vmul.f32 0.5, %v1471_v50 }
 0x32f   : > { %v1691_v13 = vmul.f32 %v1659_v29, %v1471_v50  ;;  %v1722_v53 = vadd.f32 %v1690_v11, %v1468_v33 }
 0x330   : > { %v1756_v54 = vmul.f32 0.7978846, %v1724_v59  ;;  %v1725_v21 = vadd.f32 %v1693_v5, %v1479_v14  ;;  %v1597_v5 = vmul.f32 0.5, %v1479_v14 }
 0x331   : > { %v1723_v57 = vadd.f32 %v1691_v13, %v1471_v50  ;;  %v1754_v44 = vmul.f32 0.7978846, %v1722_v53 }
 0x332   : > { %2639 = vtanh.f32 %v1756_v54  ;;  %v1757_v55 = vmul.f32 0.7978846, %v1725_v21  ;;  %v1594_v21 = vmul.f32 0.5, %v1468_v33 }
 0x333   : > { %v1755_v4 = vmul.f32 0.7978846, %v1723_v57  ;;  %2641 = vtanh.f32 %v1754_v44 }
 0x334   : > { %2643 = vtanh.f32 %v1757_v55  ;;  %v2413_v31 = vpop.f32.mrb[20].mxu1 }
 0x335   : > { %v3842_v10 = vadd.f32 %v2413_v31, %v3835_v25  ;;  %v1483_v37 = vpop.f32.mrb[21].mxu1  ;;  %2645 = vtanh.f32 %v1755_v4 }
 0x336   : > { %v3845_v35 = vadd.f32 %v3835_v25, %v1483_v37  ;;  %v2414_v17 = vpop.f32.mrb[22].mxu1 }
 0x337   : > { %v1632_v58 = vmul.f32 0.044715, %v3842_v10  ;;  %v3849_v51 = vadd.f32 %v2414_v17, %v3835_v25  ;;  %v1486_v48 = vpop.f32.mrb[23].mxu1 }
 0x338   : > { %v1630_v3 = vmul.f32 0.044715, %v3845_v35  ;;  %v3853_v15 = vadd.f32 %v3835_v25, %v1486_v48 }
 0x339   : > { %v1664_v34 = vmul.f32 %v1632_v58, %v3842_v10  ;;  %v1633_v9 = vmul.f32 0.044715, %v3849_v51 }
 0x33a   : > { %v1662_v20 = vmul.f32 %v1630_v3, %v3845_v35  ;;  %v1631_v62 = vmul.f32 0.044715, %v3853_v15 }
 0x33b   : > { %v1696_v11 = vmul.f32 %v1664_v34, %v3842_v10  ;;  %v1665_v29 = vmul.f32 %v1633_v9, %v3849_v51 }
 0x33c   : > { %v2640_v59 = vpop.eup %2639  ;;  %v1694_v13 = vmul.f32 %v1662_v20, %v3845_v35  ;;  %v1663_v53 = vmul.f32 %v1631_v62, %v3853_v15  ;;  %v2417_v54 = vpop.f32.mrb[24].mxu1 }
 0x33d   : > { %v2642_v57 = vpop.eup %2641  ;;  %v1697_v44 = vmul.f32 %v1665_v29, %v3849_v51  ;;  %v3865_v55 = vadd.f32 %v2417_v54, %v3835_v25  ;;  %v1499_v4 = vpop.f32.mrb[25].mxu1  ;;  %v1820_v31 = vadd.f32 1.0, %v2640_v59  ;;  %v1728_v50 = vadd.f32 %v1696_v11, %v3842_v10 }
 0x33e   : > { %v2644_v37 = vpop.eup %2643  ;;  %v1695_v17 = vmul.f32 %v1663_v53, %v3853_v15  ;;  %v3869_v14 = vadd.f32 %v3835_v25, %v1499_v4  ;;  %v2418_v58 = vpop.f32.mrb[26].mxu1  ;;  %v1818_v48 = vadd.f32 1.0, %v2642_v57  ;;  %v1726_v3 = vadd.f32 %v1694_v13, %v3845_v35 }
 0x33f   : > { %v2646_v33 = vpop.eup %2645  ;;  %v1636_v34 = vmul.f32 0.044715, %v3865_v55  ;;  %v3874_v9 = vadd.f32 %v2418_v58, %v3835_v25  ;;  %v1502_v20 = vpop.f32.mrb[27].mxu1  ;;  %v1821_v62 = vadd.f32 1.0, %v2644_v37  ;;  %v1852_v54 = vmul.f32 %v1820_v31, %v1596_v30 }
 0x340   : > { %v1634_v29 = vmul.f32 0.044715, %v3869_v14  ;;  %v1503_v59 = vadd.f32 %v3835_v25, %v1502_v20  ;;  %v1819_v53 = vadd.f32 1.0, %v2646_v33  ;;  %v1850_v4 = vmul.f32 %v1818_v48, %v1594_v21 }
 0x341   : > { %v1637_v57 = vmul.f32 0.044715, %v3874_v9  ;;  %v1853_v13 = vmul.f32 %v1821_v62, %v1597_v5  ;;  %v1727_v49 = vadd.f32 %v1695_v17, %v3853_v15  ;;  %v1758_v52 = vmul.f32 0.7978846, %v1726_v3 }
 0x342   : > { %v1666_v26 = vmul.f32 %v1634_v29, %v3869_v14  ;;  %v1635_v58 = vmul.f32 0.044715, %v1503_v59  ;;  %v1851_v1 = vmul.f32 %v1819_v53, %v1595_v6  ;;  %v1668_v37 = vmul.f32 %v1636_v34, %v3865_v55 }
 0x343   : > { %v1883_v11 = vpack.c.bf16 %v1853_v13, %v1852_v54  ;;  %v1759_v2 = vmul.f32 0.7978846, %v1727_v49  ;;  %2647 = vtanh.f32 %v1758_v52  ;;  %v1669_v21 = vmul.f32 %v1637_v57, %v3874_v9 }
 0x344   : > { %v1698_v18 = vmul.f32 %v1666_v26, %v3869_v14  ;;  %v1667_v20 = vmul.f32 %v1635_v58, %v1503_v59  ;;  %v2421_v33 = vpop.f32.mrb[28].mxu1  ;;  %v1882_v30 = vpack.c.bf16 %v1851_v1, %v1850_v4  ;;  %v1729_v31 = vadd.f32 %v1697_v44, %v3849_v51 }
 0x345   : > { %v1515_v5 = vpop.f32.mrb[29].mxu1  ;;  %2649 = vtanh.f32 %v1759_v2  ;;  %v1760_v3 = vmul.f32 0.7978846, %v1728_v50  ;;  %v1700_v49 = vmul.f32 %v1668_v37, %v3865_v55  ;;  %v3891_v26 = vadd.f32 %v2421_v33, %v3835_v25 }
 0x346   : > { %v1699_v17 = vmul.f32 %v1667_v20, %v1503_v59  ;;  %v3887_v6 = vadd.f32 %v3835_v25, %v1515_v5  ;;  %v2422_v48 = vpop.f32.mrb[30].mxu1  ;;  %2455 = vmatprep.mubr.bf16.mxu0 %v1882_v30  ;;  %v1761_v2 = vmul.f32 0.7978846, %v1729_v31  ;;  %v1730_v62 = vadd.f32 %v1698_v18, %v3869_v14 }
 0x347   : > { %v3894_v1 = vadd.f32 %v2422_v48, %v3835_v25  ;;  %v1518_v52 = vpop.f32.mrb[31].mxu1  ;;  %2456 = vmatmul.mubr.bf16.vlgmr.msra.gmra.mrb[16].mxu0 %v1883_v11  ;;  %2651 = vtanh.f32 %v1760_v3  ;;  %v1701_v50 = vmul.f32 %v1669_v21, %v3874_v9  ;;  %v1600_v54 = vmul.f32 0.5, %v3842_v10 }
 0x348   : > { %v1638_v44 = vmul.f32 0.044715, %v3887_v6  ;;  %v3898_v34 = vadd.f32 %v3835_v25, %v1518_v52  ;;  %2653 = vtanh.f32 %v1761_v2  ;;  %v1731_v29 = vadd.f32 %v1699_v17, %v1503_v59 }
 0x349   : > { %v1762_v57 = vmul.f32 0.7978846, %v1730_v62  ;;  %v1640_v4 = vmul.f32 0.044715, %v3891_v26  ;;  %v1598_v58 = vmul.f32 0.5, %v3845_v35  ;;  %v1601_v18 = vmul.f32 0.5, %v3849_v51 }
 0x34a   : > { %v1639_v53 = vmul.f32 0.044715, %v3898_v34  ;;  %v1670_v13 = vmul.f32 %v1638_v44, %v3887_v6  ;;  %v1763_v37 = vmul.f32 0.7978846, %v1731_v29  ;;  %v1641_v11 = vmul.f32 0.044715, %v3894_v1 }
 0x34b   : > { %2655 = vtanh.f32 %v1762_v57  ;;  %v1732_v33 = vadd.f32 %v1700_v49, %v3865_v55  ;;  %v1599_v10 = vmul.f32 0.5, %v3853_v15  ;;  %v1733_v5 = vadd.f32 %v1701_v50, %v3874_v9 }
 0x34c   : > { %v2425_v20 = vpop.f32.mrb[32].mxu1  ;;  %v1671_v30 = vmul.f32 %v1639_v53, %v3898_v34  ;;  %2657 = vtanh.f32 %v1763_v37  ;;  %v1602_v48 = vmul.f32 0.5, %v3869_v14  ;;  %v1603_v3 = vmul.f32 0.5, %v1503_v59 }
 0x34d   : > { %v1531_v21 = vpop.f32.mrb[33].mxu1  ;;  %v2648_v31 = vpop.eup %2647  ;;  %v3914_v35 = vadd.f32 %v2425_v20, %v3835_v25  ;;  %v1764_v51 = vmul.f32 0.7978846, %v1732_v33  ;;  %v1672_v49 = vmul.f32 %v1640_v4, %v3891_v26  ;;  %v1702_v2 = vmul.f32 %v1670_v13, %v3887_v6 }
 0x34e   : > { %v2426_v17 = vpop.f32.mrb[34].mxu1  ;;  %v1822_v62 = vadd.f32 1.0, %v2648_v31  ;;  %v1765_v15 = vmul.f32 0.7978846, %v1733_v5  ;;  %v1673_v29 = vmul.f32 %v1641_v11, %v3894_v1  ;;  %v3921_v53 = vmul.f32 0.5, %v3865_v55 }
 0x34f   : > { %v2650_v52 = vpop.eup %2649  ;;  %v1534_v44 = vpop.f32.mrb[35].mxu1  ;;  %2659 = vtanh.f32 %v1764_v51  ;;  %v1703_v57 = vmul.f32 %v1671_v30, %v3898_v34  ;;  %v3925_v14 = vadd.f32 %v3835_v25, %v1531_v21  ;;  %v1644_v13 = vmul.f32 0.044715, %v3914_v35 }
 0x350   : > { %v1823_v50 = vadd.f32 1.0, %v2650_v52  ;;  %v3928_v59 = vadd.f32 %v3835_v25, %v1534_v44  ;;  %2661 = vtanh.f32 %v1765_v15  ;;  %v3932_v37 = vadd.f32 %v2426_v17, %v3835_v25 }
 0x351   : > { %v2652_v4 = vpop.eup %2651  ;;  %v1854_v11 = vmul.f32 %v1822_v62, %v1598_v58  ;;  %v1704_v33 = vmul.f32 %v1672_v49, %v3891_v26  ;;  %v1605_v30 = vmul.f32 0.5, %v3874_v9  ;;  %v1734_v21 = vadd.f32 %v1702_v2, %v3887_v6 }
 0x352   : > { %v1855_v20 = vmul.f32 %v1823_v50, %v1599_v10  ;;  %v2654_v55 = vpop.eup %2653  ;;  %v1824_v5 = vadd.f32 1.0, %v2652_v4  ;;  %v1705_v31 = vmul.f32 %v1673_v29, %v3894_v1  ;;  %v3939_v44 = vmul.f32 0.5, %v3887_v6 }
 0x353   : > { %v1825_v52 = vadd.f32 1.0, %v2654_v55  ;;  %v1642_v17 = vmul.f32 0.044715, %v3925_v14  ;;  %v1643_v58 = vmul.f32 0.044715, %v3928_v59  ;;  %v1735_v10 = vadd.f32 %v1703_v57, %v3898_v34 }
 0x354   : > { %v1884_v51 = vpack.c.bf16 %v1855_v20, %v1854_v11  ;;  %v1766_v62 = vmul.f32 0.7978846, %v1734_v21  ;;  %v1676_v15 = vmul.f32 %v1644_v13, %v3914_v35  ;;  %v1645_v9 = vmul.f32 0.044715, %v3932_v37 }
 0x355   : > { %v2656_v49 = vpop.eup %2655  ;;  %v1856_v29 = vmul.f32 %v1824_v5, %v1600_v54  ;;  %v1857_v50 = vmul.f32 %v1825_v52, %v1601_v18  ;;  %v1767_v55 = vmul.f32 0.7978846, %v1735_v10  ;;  %v1736_v46 = vadd.f32 %v1704_v33, %v3891_v26 }
 0x356   : > { %v2429_v2 = vpop.f32.mrb[36].mxu1  ;;  %2459 = vmatprep.mubr.bf16.mxu0 %v1884_v51  ;;  %v2658_v4 = vpop.eup %2657  ;;  %v1826_v20 = vadd.f32 1.0, %v2656_v49  ;;  %2663 = vtanh.f32 %v1766_v62  ;;  %v1674_v51 = vmul.f32 %v1642_v17, %v3925_v14  ;;  %v1675_v54 = vmul.f32 %v1643_v58, %v3928_v59 }
 0x357   : > { %v3947_v6 = vadd.f32 %v2429_v2, %v3835_v25  ;;  %v1547_v11 = vpop.f32.mrb[37].mxu1  ;;  %v1885_v36 = vpack.c.bf16 %v1857_v50, %v1856_v29  ;;  %v1827_v13 = vadd.f32 1.0, %v2658_v4  ;;  %2665 = vtanh.f32 %v1767_v55 }
 0x358   : > { %v3950_v57 = vadd.f32 %v3835_v25, %v1547_v11  ;;  %v2430_v21 = vpop.f32.mrb[38].mxu1  ;;  %v1858_v62 = vmul.f32 %v1826_v20, %v1602_v48  ;;  %v1737_v2 = vadd.f32 %v1705_v31, %v3894_v1  ;;  %v1677_v33 = vmul.f32 %v1645_v9, %v3932_v37 }
 0x359   : > { %v3956_v18 = vadd.f32 %v2430_v21, %v3835_v25  ;;  %v1550_v5 = vpop.f32.mrb[39].mxu1  ;;  %v2660_v52 = vpop.eup %2659  ;;  %2460 = vmatmul.mubr.bf16.gmra.mrb[20].mxu0 %v1885_v36  ;;  %v1859_v49 = vmul.f32 %v1827_v13, %v1603_v3  ;;  %v1648_v17 = vmul.f32 0.044715, %v3947_v6  ;;  %v1768_v50 = vmul.f32 0.7978846, %v1736_v46 }
 0x35a   : > { %v3959_v10 = vadd.f32 %v3835_v25, %v1550_v5  ;;  %v2662_v29 = vpop.eup %2661  ;;  %v1828_v58 = vadd.f32 1.0, %v2660_v52  ;;  %v1646_v4 = vmul.f32 0.044715, %v3950_v57  ;;  %v1706_v21 = vmul.f32 %v1674_v51, %v3925_v14 }
 0x35b   : > { %v1649_v11 = vmul.f32 0.044715, %v3956_v18  ;;  %v1886_v55 = vpack.c.bf16 %v1859_v49, %v1858_v62  ;;  %v1829_v36 = vadd.f32 1.0, %v2662_v29  ;;  %v1707_v48 = vmul.f32 %v1675_v54, %v3928_v59 }
 0x35c   : > { %v1647_v3 = vmul.f32 0.044715, %v3959_v10  ;;  %v1769_v31 = vmul.f32 0.7978846, %v1737_v2  ;;  %v1860_v9 = vmul.f32 %v1828_v58, %v3921_v53  ;;  %v1607_v46 = vmul.f32 0.5, %v3898_v34 }
 0x35d   : > { %2463 = vmatprep.mubr.bf16.mxu0 %v1886_v55  ;;  %v1861_v13 = vmul.f32 %v1829_v36, %v1605_v30  ;;  %2667 = vtanh.f32 %v1768_v50  ;;  %v1708_v5 = vmul.f32 %v1676_v15, %v3914_v35  ;;  %v1709_v52 = vmul.f32 %v1677_v33, %v3932_v37 }
 0x35e   : > { %v2433_v20 = vpop.f32.mrb[40].mxu1  ;;  %v1680_v62 = vmul.f32 %v1648_v17, %v3947_v6  ;;  %2669 = vtanh.f32 %v1769_v31  ;;  %v1678_v54 = vmul.f32 %v1646_v4, %v3950_v57  ;;  %v1681_v49 = vmul.f32 %v1649_v11, %v3956_v18 }
 0x35f   : > { %v1563_v51 = vpop.f32.mrb[41].mxu1  ;;  %v3977_v2 = vadd.f32 %v2433_v20, %v3835_v25  ;;  %v1887_v30 = vpack.c.bf16 %v1861_v13, %v1860_v9  ;;  %v1679_v34 = vmul.f32 %v1647_v3, %v3959_v10  ;;  %v1738_v17 = vadd.f32 %v1706_v21, %v3925_v14 }
 0x360   : > { %v2434_v53 = vpop.f32.mrb[42].mxu1  ;;  %v2664_v29 = vpop.eup %2663  ;;  %v3981_v15 = vadd.f32 %v3835_v25, %v1563_v51  ;;  %v1739_v58 = vadd.f32 %v1707_v48, %v3928_v59  ;;  %v1608_v11 = vmul.f32 0.5, %v3891_v26  ;;  %v1609_v55 = vmul.f32 0.5, %v3894_v1 }
 0x361   : > { %v1566_v33 = vpop.f32.mrb[43].mxu1  ;;  %v3986_v50 = vadd.f32 %v2434_v53, %v3835_v25  ;;  %2464 = vmatmul.mubr.bf16.gmra.mrb[24].mxu0 %v1887_v30  ;;  %v1830_v4 = vadd.f32 1.0, %v2664_v29  ;;  %v2666_v36 = vpop.eup %2665  ;;  %v3991_v3 = vmul.f32 %v1680_v62, %v3947_v6  ;;  %v1770_v20 = vmul.f32 0.7978846, %v1738_v17 }
 0x362   : > { %v3994_v31 = vadd.f32 %v3835_v25, %v1566_v33  ;;  %v1771_v21 = vmul.f32 0.7978846, %v1739_v58  ;;  %v1710_v48 = vmul.f32 %v1678_v54, %v3950_v57  ;;  %v3998_v9 = vmul.f32 %v1681_v49, %v3956_v18 }
 0x363   : > { %v1652_v13 = vmul.f32 0.044715, %v3977_v2  ;;  %v1831_v51 = vadd.f32 1.0, %v2666_v36  ;;  %v1711_v26 = vmul.f32 %v1679_v34, %v3959_v10  ;;  %v1650_v1 = vmul.f32 0.044715, %v3981_v15 }
 0x364   : > { %v1610_v62 = vmul.f32 0.5, %v3925_v14  ;;  %2671 = vtanh.f32 %v1770_v20  ;;  %v1653_v53 = vmul.f32 0.044715, %v3986_v50  ;;  %v1862_v29 = vmul.f32 %v1830_v4, %v3939_v44 }
 0x365   : > { %v1863_v33 = vmul.f32 %v1831_v51, %v1607_v46  ;;  %2673 = vtanh.f32 %v1771_v21  ;;  %v1651_v54 = vmul.f32 0.044715, %v3994_v31  ;;  %v1740_v34 = vadd.f32 %v1708_v5, %v3914_v35 }
 0x366   : > { %v2437_v30 = vpop.f32.mrb[44].mxu1  ;;  %v1741_v58 = vadd.f32 %v1709_v52, %v3932_v37  ;;  %v1684_v14 = vmul.f32 %v1652_v13, %v3977_v2  ;;  %v1611_v46 = vmul.f32 0.5, %v3928_v59  ;;  %v1682_v21 = vmul.f32 %v1650_v1, %v3981_v15 }
 0x367   : > { %v4008_v49 = vadd.f32 %v2437_v30, %v3835_v25  ;;  %v1579_v17 = vpop.f32.mrb[45].mxu1  ;;  %v2668_v36 = vpop.eup %2667  ;;  %v1888_v8 = vpack.c.bf16 %v1863_v33, %v1862_v29  ;;  %v1772_v40 = vmul.f32 0.7978846, %v1740_v34  ;;  %v1685_v33 = vmul.f32 %v1653_v53, %v3986_v50 }
 0x368   : > { %v4014_v20 = vadd.f32 %v3835_v25, %v1579_v17  ;;  %v2438_v44 = vpop.f32.mrb[46].mxu1  ;;  %v2670_v4 = vpop.eup %2669  ;;  %v1832_v30 = vadd.f32 1.0, %v2668_v36  ;;  %v1773_v29 = vmul.f32 0.7978846, %v1741_v58  ;;  %v1683_v59 = vmul.f32 %v1651_v54, %v3994_v31 }
 0x369   : > { %v4019_v51 = vadd.f32 %v2438_v44, %v3835_v25  ;;  %v1582_v5 = vpop.f32.mrb[47].mxu1  ;;  %2467 = vmatprep.mubr.bf16.mxu0 %v1888_v8  ;;  %v1833_v13 = vadd.f32 1.0, %v2670_v4  ;;  %v1656_v1 = vmul.f32 0.044715, %v4008_v49  ;;  %2675 = vtanh.f32 %v1772_v40 }
 0x36a   : > { %v1654_v52 = vmul.f32 0.044715, %v4014_v20  ;;  %v4023_v17 = vadd.f32 %v3835_v25, %v1582_v5  ;;  %v1864_v44 = vmul.f32 %v1832_v30, %v1608_v11  ;;  %2677 = vtanh.f32 %v1773_v29 }
 0x36b   : > { %v1865_v41 = vmul.f32 %v1833_v13, %v1609_v55  ;;  %v1716_v34 = vmul.f32 %v1684_v14, %v3977_v2  ;;  %v1657_v8 = vmul.f32 0.044715, %v4019_v51  ;;  %v1612_v25 = vmul.f32 0.5, %v3914_v35 }
 0x36c   : > { %v1655_v36 = vmul.f32 0.044715, %v4023_v17  ;;  %v1742_v58 = vadd.f32 %v1710_v48, %v3950_v57  ;;  %v1714_v53 = vmul.f32 %v1682_v21, %v3981_v15  ;;  %v1686_v54 = vmul.f32 %v1654_v52, %v4014_v20 }
 0x36d   : > { %v1889_v4 = vpack.c.bf16 %v1865_v41, %v1864_v44  ;;  %v1743_v40 = vadd.f32 %v1711_v26, %v3959_v10  ;;  %v1717_v55 = vmul.f32 %v1685_v33, %v3986_v50  ;;  %v1715_v30 = vmul.f32 %v1683_v59, %v3994_v31 }
 0x36e   : > { %v2672_v11 = vpop.eup %2671  ;;  %v1688_v14 = vmul.f32 %v1656_v1, %v4008_v49  ;;  %v1774_v5 = vmul.f32 0.7978846, %v1742_v58  ;;  %v1687_v35 = vmul.f32 %v1655_v36, %v4023_v17  ;;  %v1744_v21 = vadd.f32 %v3991_v3, %v3947_v6 }
 0x36f   : > { %v2674_v13 = vpop.eup %2673  ;;  %2468 = vmatmul.mubr.bf16.gmra.mrb[28].mxu0 %v1889_v4  ;;  %v1834_v48 = vadd.f32 1.0, %v2672_v11  ;;  %v1775_v29 = vmul.f32 0.7978846, %v1743_v40  ;;  %v1689_v41 = vmul.f32 %v1657_v8, %v4019_v51  ;;  %v1745_v52 = vadd.f32 %v3998_v9, %v3956_v18 }
 0x370   : > { %v1835_v26 = vadd.f32 1.0, %v2674_v13  ;;  %2679 = vtanh.f32 %v1774_v5  ;;  %v1718_v33 = vmul.f32 %v1686_v54, %v4014_v20  ;;  %v1776_v1 = vmul.f32 0.7978846, %v1744_v21 }
 0x371   : > { %v1866_v59 = vmul.f32 %v1834_v48, %v1610_v62  ;;  %2681 = vtanh.f32 %v1775_v29  ;;  %v1777_v58 = vmul.f32 0.7978846, %v1745_v52  ;;  %v1746_v36 = vadd.f32 %v1714_v53, %v3981_v15 }
 0x372   : > { %v1867_v44 = vmul.f32 %v1835_v26, %v1611_v46  ;;  %v1747_v4 = vadd.f32 %v1715_v30, %v3994_v31  ;;  %v1719_v3 = vmul.f32 %v1687_v35, %v4023_v17  ;;  %v1613_v8 = vmul.f32 0.5, %v3932_v37 }
 0x373   : > { %2683 = vtanh.f32 %v1776_v1  ;;  %v1748_v40 = vadd.f32 %v1716_v34, %v3977_v2  ;;  %v2676_v11 = vpop.eup %2675  ;;  %v1778_v54 = vmul.f32 0.7978846, %v1746_v36  ;;  %v1720_v46 = vmul.f32 %v1688_v14, %v4008_v49 }
 0x374   : > { %v1890_v9 = vpack.c.bf16 %v1867_v44, %v1866_v59  ;;  %2685 = vtanh.f32 %v1777_v58  ;;  %v1779_v62 = vmul.f32 0.7978846, %v1747_v4  ;;  %v2678_v5 = vpop.eup %2677  ;;  %v1836_v13 = vadd.f32 1.0, %v2676_v11 }
 0x375   : > { %v1749_v53 = vadd.f32 %v1717_v55, %v3986_v50  ;;  %v1780_v48 = vmul.f32 0.7978846, %v1748_v40  ;;  %v1721_v30 = vmul.f32 %v1689_v41, %v4019_v51  ;;  %v1837_v35 = vadd.f32 1.0, %v2678_v5 }
 0x376   : > { %2471 = vmatprep.mubr.bf16.mxu0 %v1890_v9  ;;  %2687 = vtanh.f32 %v1778_v54  ;;  %v1750_v37 = vadd.f32 %v1718_v33, %v4014_v20  ;;  %v1751_v29 = vadd.f32 %v1719_v3, %v4023_v17  ;;  %v1868_v21 = vmul.f32 %v1836_v13, %v1612_v25 }
 0x377   : > { %2689 = vtanh.f32 %v1779_v62  ;;  %v1781_v34 = vmul.f32 0.7978846, %v1749_v53  ;;  %v1869_v26 = vmul.f32 %v1837_v35, %v1613_v8  ;;  %v1752_v55 = vadd.f32 %v1720_v46, %v4008_v49 }
 0x378   : > { %2691 = vtanh.f32 %v1780_v48  ;;  %v1782_v52 = vmul.f32 0.7978846, %v1750_v37  ;;  %v1783_v14 = vmul.f32 0.7978846, %v1751_v29  ;;  %v1753_v41 = vadd.f32 %v1721_v30, %v4019_v51 }
 0x379   : > { %2693 = vtanh.f32 %v1781_v34  ;;  %v1891_v1 = vpack.c.bf16 %v1869_v26, %v1868_v21  ;;  %v1784_v33 = vmul.f32 0.7978846, %v1752_v55  ;;  %v1614_v36 = vmul.f32 0.5, %v3950_v57 }
 0x37a   : > { %v2680_v59 = vpop.eup %2679  ;;  %2695 = vtanh.f32 %v1782_v52  ;;  %v1615_v25 = vmul.f32 0.5, %v3959_v10  ;;  %v1785_v3 = vmul.f32 0.7978846, %v1753_v41  ;;  %v1616_v62 = vmul.f32 0.5, %v3947_v6 }
 0x37b   : > { %v2682_v44 = vpop.eup %2681  ;;  %v1838_v58 = vadd.f32 1.0, %v2680_v59  ;;  %2697 = vtanh.f32 %v1783_v14  ;;  %2472 = vmatmul.mubr.bf16.gmra.mrb[32].mxu0 %v1891_v1  ;;  %v1617_v5 = vmul.f32 0.5, %v3956_v18  ;;  %v1618_v37 = vmul.f32 0.5, %v3981_v15 }
 0x37c   : > { %v1839_v4 = vadd.f32 1.0, %v2682_v44  ;;  %2699 = vtanh.f32 %v1784_v33  ;;  %v1619_v34 = vmul.f32 0.5, %v3994_v31  ;;  %v1620_v6 = vmul.f32 0.5, %v3977_v2 }
 0x37d   : > { %v2684_v8 = vpop.eup %2683  ;;  %v1870_v11 = vmul.f32 %v1838_v58, %v1614_v36  ;;  %2701 = vtanh.f32 %v1785_v3  ;;  %v1621_v59 = vmul.f32 0.5, %v3986_v50  ;;  %v1622_v44 = vmul.f32 0.5, %v4014_v20 }
 0x37e   : > { %v2686_v40 = vpop.eup %2685  ;;  %v1871_v9 = vmul.f32 %v1839_v4, %v1615_v25  ;;  %v1840_v54 = vadd.f32 1.0, %v2684_v8  ;;  %v1623_v15 = vmul.f32 0.5, %v4023_v17 }
 0x37f   : > { %v1841_v46 = vadd.f32 1.0, %v2686_v40 }
 0x380   : > { %v2688_v13 = vpop.eup %2687  ;;  %v1892_v53 = vpack.c.bf16 %v1871_v9, %v1870_v11  ;;  %v1872_v57 = vmul.f32 %v1840_v54, %v1616_v62  ;;  %v1624_v11 = vmul.f32 0.5, %v4008_v49  ;;  %v1625_v9 = vmul.f32 0.5, %v4019_v51 }
 0x381   : > { %v2690_v48 = vpop.eup %2689  ;;  %v1873_v30 = vmul.f32 %v1841_v46, %v1617_v5  ;;  %v1842_v10 = vadd.f32 1.0, %v2688_v13  ;;  %v4073_v46 = vld [vmem:[%s4217_s4 + $0x3] ss:$0 sm:$0xff] }
 0x382   : > { %v2692_v35 = vpop.eup %2691  ;;  %2475 = vmatprep.mubr.bf16.mxu0 %v1892_v53  ;;  %v1843_v29 = vadd.f32 1.0, %v2690_v48 }
 0x383   : > { %v2694_v21 = vpop.eup %2693  ;;  %v1893_v26 = vpack.c.bf16 %v1873_v30, %v1872_v57  ;;  %v1844_v52 = vadd.f32 1.0, %v2692_v35  ;;  %v1874_v14 = vmul.f32 %v1842_v10, %v1618_v37 }
 0x384   : > { %v2696_v18 = vpop.eup %2695  ;;  %v1875_v55 = vmul.f32 %v1843_v29, %v1619_v34  ;;  %v1845_v1 = vadd.f32 1.0, %v2694_v21 }
 0x385   : > { %v2698_v41 = vpop.eup %2697  ;;  %2476 = vmatmul.mubr.bf16.gmra.mrb[36].mxu0 %v1893_v26  ;;  %v1846_v58 = vadd.f32 1.0, %v2696_v18  ;;  %v1876_v33 = vmul.f32 %v1844_v52, %v1620_v6 }
 0x386   : > { %v1894_v31 = vpack.c.bf16 %v1875_v55, %v1874_v14  ;;  %v1877_v36 = vmul.f32 %v1845_v1, %v1621_v59  ;;  %v1847_v25 = vadd.f32 1.0, %v2698_v41  ;;  %v2700_v4 = vpop.eup %2699 }
 0x387   : > { %v2702_v2 = vpop.eup %2701  ;;  %v1878_v8 = vmul.f32 %v1846_v58, %v1622_v44  ;;  %v1848_v50 = vadd.f32 1.0, %v2700_v4 }
 0x388   : > { %2479 = vmatprep.mubr.bf16.mxu0 %v1894_v31  ;;  %v1895_v3 = vpack.c.bf16 %v1877_v36, %v1876_v33  ;;  %v1879_v40 = vmul.f32 %v1847_v25, %v1623_v15  ;;  %v1849_v20 = vadd.f32 1.0, %v2702_v2 }
 0x389   : > { %v1880_v17 = vmul.f32 %v1848_v50, %v1624_v11 }
 0x38a   : > { %v1896_v54 = vpack.c.bf16 %v1879_v40, %v1878_v8  ;;  %v1881_v62 = vmul.f32 %v1849_v20, %v1625_v9 }
 0x38c   : > { %v1897_v5 = vpack.c.bf16 %v1881_v62, %v1880_v17 }
 0x38d   : > { %2480 = vmatmul.mubr.bf16.gmra.mrb[40].mxu0 %v1895_v3 }
 0x38e   : > { %2483 = vmatprep.mubr.bf16.mxu0 %v1896_v54 }
 0x395   : > { %2484 = vmatmul.mubr.bf16.gmra.mrb[44].mxu0 %v1897_v5 }
 0x41a   : > { %v2457_v13 = vpop.f32.mrb[16].mxu0 }
 0x41b   : > { %v2009_v53 = vadd.f32 %v2457_v13, %v4073_v46  ;;  %v2000_v48 = vpop.f32.mrb[17].mxu0 }
 0x41c   : > { %v2001_v49 = vadd.f32 %v4073_v46, %v2000_v48  ;;  %v2458_v51 = vpop.f32.mrb[18].mxu0 }
 0x41d   : > { %v2129_v57 = vadd.f32 %v2009_v53, %v3617_v19  ;;  %v2012_v30 = vadd.f32 %v2458_v51, %v4073_v46  ;;  %v2003_v10 = vpop.f32.mrb[19].mxu0 }
 0x41e   : > { %v2127_v35 = vadd.f32 %v2001_v49, %v3607_v38  ;;  %v2004_v37 = vadd.f32 %v4073_v46, %v2003_v10  ;;  %v4344_v10 = vld [vmem:[#allocation8_spill] sm:$0xff] }
 0x41f   : > { %2161 = vst.msk [vmem:[%s4081_s19 + $0x10] sm:$0xff] %vm328_vm0, %v2129_v57  ;;  %v2130_v34 = vadd.f32 %v2012_v30, %v3620_v56 }
 0x420   : > { %2159 = vst.msk [vmem:[%s4081_s19] sm:$0xff] %vm328_vm0, %v2127_v35  ;;  %v2128_v29 = vadd.f32 %v2004_v37, %v3611_v27  ;;  %v4345_v37 = vld [vmem:[#allocation14_spill] sm:$0xff] }
 0x421   : > { %2162 = vst.msk [vmem:[%s4081_s19 + $0x18] sm:$0xff] %vm328_vm0, %v2130_v34 }
 0x422   : > { %2160 = vst.msk [vmem:[%s4081_s19 + $0x8] sm:$0xff] %vm328_vm0, %v2128_v29  ;;  %v4346_v29 = vld [vmem:[#allocation13_spill] sm:$0xff] }
 0x42c   : > { %v2461_v19 = vpop.f32.mrb[20].mxu0 }
 0x42d   : > { %v2025_v38 = vadd.f32 %v2461_v19, %v4073_v46  ;;  %v2016_v21 = vpop.f32.mrb[21].mxu0 }
 0x42e   : > { %v2017_v26 = vadd.f32 %v4073_v46, %v2016_v21  ;;  %v2462_v6 = vpop.f32.mrb[22].mxu0 }
 0x42f   : > { %v2133_v56 = vadd.f32 %v2025_v38, %v3647_v43  ;;  %v2028_v52 = vadd.f32 %v2462_v6, %v4073_v46  ;;  %v2019_v18 = vpop.f32.mrb[23].mxu0 }
 0x430   : > { %v2131_v27 = vadd.f32 %v2017_v26, %v3632_v60  ;;  %v2020_v14 = vadd.f32 %v4073_v46, %v2019_v18 }
 0x431   : > { %2165 = vst.msk [vmem:[%s4081_s19 + $0x30] sm:$0xff] %vm328_vm0, %v2133_v56  ;;  %v2134_v55 = vadd.f32 %v2028_v52, %v3650_v24  ;;  %v4347_v56 = vld [vmem:[#allocation30_spill] sm:$0xff] }
 0x432   : > { %2163 = vst.msk [vmem:[%s4081_s19 + $0x20] sm:$0xff] %vm328_vm0, %v2131_v27  ;;  %v2132_v59 = vadd.f32 %v2020_v14, %v3636_v42  ;;  %v4348_v14 = vld [vmem:[#allocation15_spill] sm:$0xff] }
 0x433   : > { %2166 = vst.msk [vmem:[%s4081_s19 + $0x38] sm:$0xff] %vm328_vm0, %v2134_v55 }
 0x434   : > { %2164 = vst.msk [vmem:[%s4081_s19 + $0x28] sm:$0xff] %vm328_vm0, %v2132_v59  ;;  %v2465_v43 = vpop.f32.mrb[24].mxu0 }
 0x435   : > { %v2041_v60 = vadd.f32 %v2465_v43, %v4073_v46  ;;  %v2032_v1 = vpop.f32.mrb[25].mxu0  ;;  %v4349_v43 = vld [vmem:[#allocation16_spill] sm:$0xff] }
 0x436   : > { %v2033_v41 = vadd.f32 %v4073_v46, %v2032_v1  ;;  %v2466_v44 = vpop.f32.mrb[26].mxu0  ;;  %v4350_v1 = vld [vmem:[#allocation26_spill] sm:$0xff] }
 0x437   : > { %v2137_v24 = vadd.f32 %v2041_v60, %v3673_v39  ;;  %v2044_v15 = vadd.f32 %v2466_v44, %v4073_v46  ;;  %v2035_v58 = vpop.f32.mrb[27].mxu0 }
 0x438   : > { %v2135_v42 = vadd.f32 %v2033_v41, %v3657_v0  ;;  %v2036_v31 = vadd.f32 %v4073_v46, %v2035_v58 }
 0x439   : > { %2169 = vst.msk [vmem:[%s4081_s19 + $0x50] sm:$0xff] %vm328_vm0, %v2137_v24  ;;  %v2138_v33 = vadd.f32 %v2044_v15, %v3676_v63 }
 0x43a   : > { %2167 = vst.msk [vmem:[%s4081_s19 + $0x40] sm:$0xff] %vm328_vm0, %v2135_v42  ;;  %v2136_v36 = vadd.f32 %v2036_v31, %v3662_v22  ;;  %v4351_v31 = vld [vmem:[#allocation21_spill] sm:$0xff] }
 0x43b   : > { %2170 = vst.msk [vmem:[%s4081_s19 + $0x58] sm:$0xff] %vm328_vm0, %v2138_v33 }
 0x43c   : > { %2168 = vst.msk [vmem:[%s4081_s19 + $0x48] sm:$0xff] %vm328_vm0, %v2136_v36 }
 0x442   : > { %v2469_v39 = vpop.f32.mrb[28].mxu0 }
 0x443   : > { %v2057_v0 = vadd.f32 %v2469_v39, %v4073_v46  ;;  %v2048_v25 = vpop.f32.mrb[29].mxu0 }
 0x444   : > { %v2049_v4 = vadd.f32 %v4073_v46, %v2048_v25  ;;  %v2470_v2 = vpop.f32.mrb[30].mxu0 }
 0x445   : > { %v2141_v63 = vadd.f32 %v2057_v0, %v3698_v23  ;;  %v2060_v3 = vadd.f32 %v2470_v2, %v4073_v46  ;;  %v2051_v8 = vpop.f32.mrb[31].mxu0  ;;  %v4352_v0 = vld [vmem:[#allocation28_spill] sm:$0xff]  ;;  %v4353_v2 = vld [vmem:[#allocation25_spill] sm:$0xff] }
 0x446   : > { %v2139_v22 = vadd.f32 %v2049_v4, %v3683_v32  ;;  %v2052_v40 = vadd.f32 %v4073_v46, %v2051_v8 }
 0x447   : > { %2173 = vst.msk [vmem:[%s4081_s19 + $0x70] sm:$0xff] %vm328_vm0, %v2141_v63  ;;  %v2142_v50 = vadd.f32 %v2060_v3, %v3701_v47  ;;  %v4354_v3 = vld [vmem:[#allocation32_spill] sm:$0xff] }
 0x448   : > { %2171 = vst.msk [vmem:[%s4081_s19 + $0x60] sm:$0xff] %vm328_vm0, %v2139_v22  ;;  %v2140_v11 = vadd.f32 %v2052_v40, %v3688_v61 }
 0x449   : > { %2174 = vst.msk [vmem:[%s4081_s19 + $0x78] sm:$0xff] %vm328_vm0, %v2142_v50 }
 0x44a   : > { %2172 = vst.msk [vmem:[%s4081_s19 + $0x68] sm:$0xff] %vm328_vm0, %v2140_v11 }
 0x44e   : > { %v2473_v23 = vpop.f32.mrb[32].mxu0 }
 0x44f   : > { %v2073_v32 = vadd.f32 %v2473_v23, %v4073_v46  ;;  %v2064_v9 = vpop.f32.mrb[33].mxu0 }
 0x450   : > { %v2065_v20 = vadd.f32 %v4073_v46, %v2064_v9  ;;  %v2474_v54 = vpop.f32.mrb[34].mxu0 }
 0x451   : > { %v2145_v47 = vadd.f32 %v2073_v32, %v3723_v12  ;;  %v2076_v17 = vadd.f32 %v2474_v54, %v4073_v46  ;;  %v2067_v62 = vpop.f32.mrb[35].mxu0 }
 0x452   : > { %v2143_v61 = vadd.f32 %v2065_v20, %v3711_v28  ;;  %v2068_v5 = vadd.f32 %v4073_v46, %v2067_v62 }
 0x453   : > { %2177 = vst.msk [vmem:[%s4081_s19 + $0x90] sm:$0xff] %vm328_vm0, %v2145_v47  ;;  %v2146_v13 = vadd.f32 %v2076_v17, %v3726_v45 }
 0x454   : > { %2175 = vst.msk [vmem:[%s4081_s19 + $0x80] sm:$0xff] %vm328_vm0, %v2143_v61  ;;  %v2144_v53 = vadd.f32 %v2068_v5, %v3714_v16 }
 0x455   : > { %2178 = vst.msk [vmem:[%s4081_s19 + $0x98] sm:$0xff] %vm328_vm0, %v2146_v13 }
 0x456   : > { %2176 = vst.msk [vmem:[%s4081_s19 + $0x88] sm:$0xff] %vm328_vm0, %v2144_v53 }
 0x458   : > { %v2477_v12 = vpop.f32.mrb[36].mxu0 }
 0x459   : > { %v2089_v28 = vadd.f32 %v2477_v12, %v4073_v46  ;;  %v2080_v48 = vpop.f32.mrb[37].mxu0 }
 0x45a   : > { %v2081_v49 = vadd.f32 %v4073_v46, %v2080_v48  ;;  %v2478_v51 = vpop.f32.mrb[38].mxu0 }
 0x45b   : > { %v2149_v45 = vadd.f32 %v2089_v28, %v3750_v7  ;;  %v2092_v57 = vadd.f32 %v2478_v51, %v4073_v46  ;;  %v2083_v30 = vpop.f32.mrb[39].mxu0 }
 0x45c   : > { %v2147_v16 = vadd.f32 %v2081_v49, %v4344_v10  ;;  %v2084_v35 = vadd.f32 %v4073_v46, %v2083_v30 }
 0x45d   : > { %2181 = vst.msk [vmem:[%s4081_s19 + $0xb0] sm:$0xff] %vm328_vm0, %v2149_v45  ;;  %v2150_v34 = vadd.f32 %v2092_v57, %v4345_v37 }
 0x45e   : > { %2179 = vst.msk [vmem:[%s4081_s19 + $0xa0] sm:$0xff] %vm328_vm0, %v2147_v16  ;;  %v2148_v19 = vadd.f32 %v2084_v35, %v4346_v29 }
 0x45f   : > { %2182 = vst.msk [vmem:[%s4081_s19 + $0xb8] sm:$0xff] %vm328_vm0, %v2150_v34 }
 0x460   : > { %2180 = vst.msk [vmem:[%s4081_s19 + $0xa8] sm:$0xff] %vm328_vm0, %v2148_v19  ;;  %v2481_v7 = vpop.f32.mrb[40].mxu0 }
 0x461   : > { %v2105_v38 = vadd.f32 %v2481_v7, %v4073_v46  ;;  %v2096_v21 = vpop.f32.mrb[41].mxu0 }
 0x462   : > { %v2097_v26 = vadd.f32 %v4073_v46, %v2096_v21  ;;  %v2482_v6 = vpop.f32.mrb[42].mxu0 }
 0x463   : > { %v2153_v52 = vadd.f32 %v2105_v38, %v4347_v56  ;;  %v2108_v18 = vadd.f32 %v2482_v6, %v4073_v46  ;;  %v2099_v27 = vpop.f32.mrb[43].mxu0 }
 0x464   : > { %v2151_v55 = vadd.f32 %v2097_v26, %v4348_v14  ;;  %v2100_v59 = vadd.f32 %v4073_v46, %v2099_v27 }
 0x465   : > { %2185 = vst.msk [vmem:[%s4081_s19 + $0xd0] sm:$0xff] %vm328_vm0, %v2153_v52  ;;  %v2154_v60 = vadd.f32 %v2108_v18, %v4349_v43 }
 0x466   : > { %2183 = vst.msk [vmem:[%s4081_s19 + $0xc0] sm:$0xff] %vm328_vm0, %v2151_v55  ;;  %v2152_v41 = vadd.f32 %v2100_v59, %v4350_v1 }
 0x467   : > { %2186 = vst.msk [vmem:[%s4081_s19 + $0xd8] sm:$0xff] %vm328_vm0, %v2154_v60 }
 0x468   : > { %2184 = vst.msk [vmem:[%s4081_s19 + $0xc8] sm:$0xff] %vm328_vm0, %v2152_v41  ;;  %v2485_v44 = vpop.f32.mrb[44].mxu0 }
 0x469   : > { %v2121_v24 = vadd.f32 %v2485_v44, %v4073_v46  ;;  %v2112_v15 = vpop.f32.mrb[45].mxu0 }
 0x46a   : > { %v2113_v58 = vadd.f32 %v4073_v46, %v2112_v15  ;;  %v2486_v42 = vpop.f32.mrb[46].mxu0 }
 0x46b   : > { %v2157_v33 = vadd.f32 %v2121_v24, %v4351_v31  ;;  %v2124_v36 = vadd.f32 %v2486_v42, %v4073_v46  ;;  %v2115_v39 = vpop.f32.mrb[47].mxu0 }
 0x46c   : > { %v2155_v25 = vadd.f32 %v2113_v58, %v4352_v0  ;;  %v2116_v4 = vadd.f32 %v4073_v46, %v2115_v39 }
 0x46d   : > { %2189 = vst.msk [vmem:[%s4081_s19 + $0xf0] sm:$0xff] %vm328_vm0, %v2157_v33  ;;  %v2158_v63 = vadd.f32 %v2124_v36, %v4353_v2 }
 0x46e   : > { %2187 = vst.msk [vmem:[%s4081_s19 + $0xe0] sm:$0xff] %vm328_vm0, %v2155_v25  ;;  %v2156_v8 = vadd.f32 %v2116_v4, %v4354_v3 }
 0x46f   : > { %2190 = vst.msk [vmem:[%s4081_s19 + $0xf8] sm:$0xff] %vm328_vm0, %v2158_v63 }
 0x470   : > { %2188 = vst.msk [vmem:[%s4081_s19 + $0xe8] sm:$0xff] %vm328_vm0, %v2156_v8 }
 0x471 PF: > { %s16_s21 = sadd.s32 1, %s2709_s21  }
 0x472   : > { %p13_p4 = scmp.ge.s32.totalorder %s16_s21, 4  }
 0x474   :  { %15 = sbr.rel (!%p13_p4) target bundleno = 1 (0x1), region = 74 }

</bundles_post_ra>
